<compile_context>
chip_gen: v7x
topology: tpu7x:2x2x1
jax: 0.10.0
libtpu: 0.0.40
codegen_flags: <defaults>
</compile_context>

<pallas_src>
import numpy as np
import jax
import jax.numpy as jnp
from jax.experimental import pallas as pl
from jax.experimental.pallas import tpu as pltpu

LANE = 128  # TPU vreg lane width


# ---------------------------------------------------------------------------
# Fused whole-network kernel (one sample per grid step)
# ---------------------------------------------------------------------------
def net_kernel(x_ref, a1_ref, b1_ref, s1_ref, a2_ref, b2_ref, s2_ref,
               w3_ref, b3_ref, o_ref, x1p_ref, x2p_ref):
    f32 = jnp.float32

    def conv_stage(xpad_ref, rows, a_ref, s_ref, b_ref):
        """3x3 conv (pad=1) + 2x2 max-pool + bias + ReLU, all via matmuls.

        xpad_ref: [rows+2, Win*Cin] row-padded input (first/last row are zero)
        a_ref   : [2, 3, Win*Cin, (Win//2)*Cout] banded conv matrices per
                  (pool column parity qx, tap row offset dy)
        s_ref   : [2, rows//2, rows] one-hot row-pool selection matrices
        b_ref   : [1, (Win//2)*Cout] bias replicated per pooled column
        """
        branches = []
        for qx in range(2):                       # pool column parity
            acc = None
            for dy in range(3):                   # conv tap row offset
                t = jnp.dot(xpad_ref[dy:dy + rows, :], a_ref[qx, dy],
                            preferred_element_type=f32)
                acc = t if acc is None else acc + t
            branches.append(acc)
        zc = jnp.maximum(branches[0], branches[1])        # column-pooled conv
        # 2x2 row pooling via one-hot row-selection matmuls (exact selection).
        pooled = jnp.maximum(
            jnp.dot(s_ref[0], zc, preferred_element_type=f32),
            jnp.dot(s_ref[1], zc, preferred_element_type=f32))
        # bias + ReLU hoisted after the max (monotone => identical numerics).
        return jnp.maximum(pooled + b_ref[...], 0.0)

    # ---- stage 1: conv1(1->10) + pool : 28x28 -> [14, 14*10] ---------------
    x1p_ref[0:1, :] = jnp.zeros((1, 28), f32)
    x1p_ref[29:30, :] = jnp.zeros((1, 28), f32)
    x1p_ref[1:29, :] = x_ref[0, 0]
    act1 = conv_stage(x1p_ref, 28, a1_ref, s1_ref, b1_ref)   # [14, 140]

    # ---- stage 2: conv2(10->20) + pool : [14,140] -> [7, 7*20] -------------
    x2p_ref[0:1, :] = jnp.zeros((1, 140), f32)
    x2p_ref[15:16, :] = jnp.zeros((1, 140), f32)
    x2p_ref[1:15, :] = act1
    act2 = conv_stage(x2p_ref, 14, a2_ref, s2_ref, b2_ref)   # [7, 140]

    # ---- fc3: 980 -> 10 (output lane-padded to 128) -------------------------
    acc = b3_ref[...]                                        # [1, 128]
    for i in range(7):
        acc = acc + jnp.dot(act2[i:i + 1, :], w3_ref[i],
                            preferred_element_type=f32)
    o_ref[0] = acc


# ---------------------------------------------------------------------------
# Wrapper: single pallas_call for the whole network
# ---------------------------------------------------------------------------
def net_forward_impl(x_nchw, prep):
    n, c, h, w = x_nchw.shape
    assert (c, h, w) == (1, 28, 28), "Net expects [N, 1, 28, 28] inputs"
    x = x_nchw.astype(jnp.float32)

    out = pl.pallas_call(
        net_kernel,
        out_shape=jax.ShapeDtypeStruct((n, 1, LANE), jnp.float32),
        grid=(n,),
        in_specs=[
            pl.BlockSpec((1, 1, 28, 28), lambda b: (b, 0, 0, 0)),    # input sample
            pl.BlockSpec((2, 3, 28, 140), lambda b: (0, 0, 0, 0)),   # conv1 banded mats
            pl.BlockSpec((1, 140), lambda b: (0, 0)),                # conv1 bias row
            pl.BlockSpec((2, 14, 28), lambda b: (0, 0, 0)),          # stage1 row-pool sel
            pl.BlockSpec((2, 3, 140, 140), lambda b: (0, 0, 0, 0)),  # conv2 banded mats
            pl.BlockSpec((1, 140), lambda b: (0, 0)),                # conv2 bias row
            pl.BlockSpec((2, 7, 14), lambda b: (0, 0, 0)),           # stage2 row-pool sel
            pl.BlockSpec((7, 140, LANE), lambda b: (0, 0, 0)),       # fc3 weight
            pl.BlockSpec((1, LANE), lambda b: (0, 0)),               # fc3 bias
        ],
        out_specs=pl.BlockSpec((1, 1, LANE), lambda b: (b, 0, 0)),
        scratch_shapes=[
            pltpu.VMEM((30, 28), jnp.float32),    # row-padded conv1 input
            pltpu.VMEM((16, 140), jnp.float32),   # row-padded conv2 input
        ],
        compiler_params=pltpu.CompilerParams(
            dimension_semantics=("parallel",)),   # batch across cores on v7x
    )(x, prep["a1"], prep["b1"], prep["s1"], prep["a2"], prep["b2"],
      prep["s2"], prep["w3"], prep["b3"])
    return out[:, 0, :10]


net_forward = jax.jit(net_forward_impl)


# ---------------------------------------------------------------------------
# Parameters (deterministic synthetic init, torch-convention semantics)
# ---------------------------------------------------------------------------
def init_params(key):
    k1, k2, k3, k4, k5, k6 = jax.random.split(key, 6)
    return {
        # conv weights stored HWIO (= torch [Cout,Cin,3,3].transpose(2,3,1,0))
        "conv1_w": jax.random.normal(k1, (3, 3, 1, 10), jnp.float32) / 3.0,
        "conv1_b": jax.random.normal(k2, (10,), jnp.float32) * 0.1,
        "conv2_w": jax.random.normal(k3, (3, 3, 10, 20), jnp.float32) / jnp.sqrt(90.0),
        "conv2_b": jax.random.normal(k4, (20,), jnp.float32) * 0.1,
        # fc weight stored [in=980 (torch CHW flatten order), out=10]
        "fc3_w": jax.random.normal(k5, (980, 10), jnp.float32) / jnp.sqrt(980.0),
        "fc3_b": jax.random.normal(k6, (10,), jnp.float32) * 0.1,
    }


def _banded_conv_mats(w_hwio, win, jout):
    """a[qx, dy][w*Cin+ci, j*Cout+co] = W[dy, dx, ci, co] with dx = w-(2j+qx-1)."""
    kh, kw, cin, cout = w_hwio.shape
    per_qx = []
    for qx in range(2):
        per_dy = []
        for dy in range(kh):
            acc = jnp.zeros((win, cin, jout, cout), jnp.float32)
            for dx in range(kw):
                sel = np.zeros((win, jout), np.float32)
                for j in range(jout):
                    w = 2 * j + qx + dx - 1        # conv pad=1, pool stride 2
                    if 0 <= w < win:               # column zero-padding folded in
                        sel[w, j] = 1.0
                acc = acc + (jnp.asarray(sel)[:, None, :, None]
                             * w_hwio[dy, dx][None, :, None, :])
            per_dy.append(acc.reshape(win * cin, jout * cout))
        per_qx.append(jnp.stack(per_dy))
    return jnp.stack(per_qx)                       # [2, 3, win*cin, jout*cout]


def _row_pool_select(hin):
    hout = hin // 2
    s = np.zeros((2, hout, hin), np.float32)
    for p in range(2):
        for i in range(hout):
            s[p, i, 2 * i + p] = 1.0
    return jnp.asarray(s)


def prepare_params(params):
    """One-time conversion into kernel-friendly, VMEM-resident layouts."""
    a1 = _banded_conv_mats(params["conv1_w"], win=28, jout=14)   # [2,3, 28,140]
    a2 = _banded_conv_mats(params["conv2_w"], win=14, jout=7)    # [2,3,140,140]
    b1 = jnp.tile(params["conv1_b"], 14)[None, :]                # [1,140]
    b2 = jnp.tile(params["conv2_b"], 7)[None, :]                 # [1,140]
    s1 = _row_pool_select(28)                                    # [2,14,28]
    s2 = _row_pool_select(14)                                    # [2, 7,14]
    # fc3: regroup torch-CHW flatten rows (co*49 + i*7 + j) into the kernel's
    # activation layout act2[i, j*20+co]; pad 10 -> 128 output lanes.
    wf = params["fc3_w"].reshape(20, 7, 7, 10).transpose(1, 2, 0, 3)  # [i,j,co,o]
    w3 = jnp.pad(wf.reshape(7, 140, 10), ((0, 0), (0, 0), (0, LANE - 10)))
    b3 = jnp.pad(params["fc3_b"][None, :], ((0, 0), (0, LANE - 10)))
    return {"a1": a1, "b1": b1, "s1": s1, "a2": a2, "b2": b2, "s2": s2,
            "w3": w3.astype(jnp.float32), "b3": b3.astype(jnp.float32)}


# ---------------------------------------------------------------------------
# Plain-JAX reference (torch semantics) for a sanity check
# ---------------------------------------------------------------------------
def reference_forward(x_nchw, params):
    x = jnp.transpose(x_nchw, (0, 2, 3, 1)).astype(jnp.float32)

    def conv_relu(x, w, b):
        y = jax.lax.conv_general_dilated(
            x, w, window_strides=(1, 1), padding="SAME",
            dimension_numbers=("NHWC", "HWIO", "NHWC"))
        return jnp.maximum(y + b, 0.0)

    def pool(x):
        return jax.lax.reduce_window(
            x, -jnp.inf, jax.lax.max, (1, 2, 2, 1), (1, 2, 2, 1), "VALID")

    x = pool(conv_relu(x, params["conv1_w"], params["conv1_b"]))
    x = pool(conv_relu(x, params["conv2_w"], params["conv2_b"]))
    x = jnp.transpose(x, (0, 3, 1, 2)).reshape(x.shape[0], 980)  # torch CHW flatten
    return x @ params["fc3_w"] + params["fc3_b"]


if __name__ == "__main__":
    # fc3 expects 980 = 20*7*7 features -> 28x28 spatial, 1 input channel.
    x = jax.random.normal(jax.random.PRNGKey(0), (2, 1, 28, 28), dtype=jnp.float32)
    params = init_params(jax.random.PRNGKey(42))
    prep = prepare_params(params)

    out = jax.block_until_ready(net_forward(x, prep))

    assert out.shape == (2, 10), out.shape
    assert bool(jnp.all(jnp.isfinite(out)))

    ref = reference_forward(x, params)
    max_err = float(jnp.max(jnp.abs(out - ref)))
    assert bool(jnp.allclose(out, ref, atol=3e-2, rtol=3e-2)), max_err

    print("KERNEL_OK")
</pallas_src>

<mosaic_0001>
module attributes {stable_mosaic.version = 11 : i64} {
  func.func @net_kernel(%arg0: i32, %arg1: memref<1x1x28x28xf32, #tpu.memory_space<vmem>>, %arg2: memref<2x3x28x140xf32, #tpu.memory_space<vmem>>, %arg3: memref<1x140xf32, #tpu.memory_space<vmem>>, %arg4: memref<2x14x28xf32, #tpu.memory_space<vmem>>, %arg5: memref<2x3x140x140xf32, #tpu.memory_space<vmem>>, %arg6: memref<1x140xf32, #tpu.memory_space<vmem>>, %arg7: memref<2x7x14xf32, #tpu.memory_space<vmem>>, %arg8: memref<7x140x128xf32, #tpu.memory_space<vmem>>, %arg9: memref<1x128xf32, #tpu.memory_space<vmem>>, %arg10: memref<1x1x128xf32, #tpu.memory_space<vmem>>, %arg11: memref<30x28xf32, #tpu.memory_space<vmem>>, %arg12: memref<16x140xf32, #tpu.memory_space<vmem>>) attributes {dimension_semantics = [#tpu.dimension_semantics<parallel>], iteration_bounds = array<i64: 2>, scalar_prefetch = 0 : i64, scratch_operands = 2 : i64, tpu.core_type = #tpu.core_type<tc>, window_params = [{transform_indices = @transform_0, window_bounds = array<i64: 1, 1, 28, 28>}, {pipeline_mode = #tpu.pipeline_mode<synchronous>, transform_indices = @transform_1, window_bounds = array<i64: 2, 3, 28, 140>}, {pipeline_mode = #tpu.pipeline_mode<synchronous>, transform_indices = @transform_2, window_bounds = array<i64: 1, 140>}, {pipeline_mode = #tpu.pipeline_mode<synchronous>, transform_indices = @transform_3, window_bounds = array<i64: 2, 14, 28>}, {pipeline_mode = #tpu.pipeline_mode<synchronous>, transform_indices = @transform_4, window_bounds = array<i64: 2, 3, 140, 140>}, {pipeline_mode = #tpu.pipeline_mode<synchronous>, transform_indices = @transform_5, window_bounds = array<i64: 1, 140>}, {pipeline_mode = #tpu.pipeline_mode<synchronous>, transform_indices = @transform_6, window_bounds = array<i64: 2, 7, 14>}, {pipeline_mode = #tpu.pipeline_mode<synchronous>, transform_indices = @transform_7, window_bounds = array<i64: 7, 140, 128>}, {pipeline_mode = #tpu.pipeline_mode<synchronous>, transform_indices = @transform_8, window_bounds = array<i64: 1, 128>}, {transform_indices = @transform_9, window_bounds = array<i64: 1, 1, 128>}]} {
    %cst = arith.constant 0.000000e+00 : f32
    %0 = vector.broadcast %cst : f32 to vector<1x28xf32>
    %c0 = arith.constant 0 : index
    %c0_0 = arith.constant 0 : index
    %1 = vector.load %arg11[%c0, %c0_0] : memref<30x28xf32, #tpu.memory_space<vmem>>, vector<1x28xf32>
    tpu.vector_store %arg11[%c0, %c0_0], %0 {strides = array<i32>} : memref<30x28xf32, #tpu.memory_space<vmem>>, vector<1x28xf32>,
    %cst_1 = arith.constant 0.000000e+00 : f32
    %2 = vector.broadcast %cst_1 : f32 to vector<1x28xf32>
    %c29 = arith.constant 29 : index
    %c0_2 = arith.constant 0 : index
    %3 = vector.load %arg11[%c29, %c0_2] : memref<30x28xf32, #tpu.memory_space<vmem>>, vector<1x28xf32>
    tpu.vector_store %arg11[%c29, %c0_2], %2 {strides = array<i32>} : memref<30x28xf32, #tpu.memory_space<vmem>>, vector<1x28xf32>,
    %c0_3 = arith.constant 0 : index
    %c0_4 = arith.constant 0 : index
    %c0_5 = arith.constant 0 : index
    %c0_6 = arith.constant 0 : index
    %4 = vector.load %arg1[%c0_3, %c0_4, %c0_5, %c0_6] : memref<1x1x28x28xf32, #tpu.memory_space<vmem>>, vector<1x1x28x28xf32>
    %5 = vector.shape_cast %4 : vector<1x1x28x28xf32> to vector<28x28xf32>
    %c1 = arith.constant 1 : index
    %c0_7 = arith.constant 0 : index
    %6 = vector.load %arg11[%c1, %c0_7] : memref<30x28xf32, #tpu.memory_space<vmem>>, vector<28x28xf32>
    tpu.vector_store %arg11[%c1, %c0_7], %5 {strides = array<i32>} : memref<30x28xf32, #tpu.memory_space<vmem>>, vector<28x28xf32>,
    %c0_8 = arith.constant 0 : index
    %c0_9 = arith.constant 0 : index
    %7 = vector.load %arg11[%c0_8, %c0_9] : memref<30x28xf32, #tpu.memory_space<vmem>>, vector<28x28xf32>
    %c0_10 = arith.constant 0 : index
    %c0_11 = arith.constant 0 : index
    %c0_12 = arith.constant 0 : index
    %c0_13 = arith.constant 0 : index
    %8 = vector.load %arg2[%c0_10, %c0_11, %c0_12, %c0_13] : memref<2x3x28x140xf32, #tpu.memory_space<vmem>>, vector<1x1x28x140xf32>
    %9 = vector.shape_cast %8 : vector<1x1x28x140xf32> to vector<28x140xf32>
    %cst_14 = arith.constant dense<0.000000e+00> : vector<28x140xf32>
    %10 = tpu.matmul %7, %9, %cst_14 {dimension_numbers = #tpu.dot_dimension_numbers<[1], [0], [0], [1], [0, 0, 1, 1], [], []>} : vector<28x28xf32>, vector<28x140xf32>, vector<28x140xf32> -> vector<28x140xf32>
    %c1_15 = arith.constant 1 : index
    %c0_16 = arith.constant 0 : index
    %11 = vector.load %arg11[%c1_15, %c0_16] : memref<30x28xf32, #tpu.memory_space<vmem>>, vector<28x28xf32>
    %c0_17 = arith.constant 0 : index
    %c1_18 = arith.constant 1 : index
    %c0_19 = arith.constant 0 : index
    %c0_20 = arith.constant 0 : index
    %12 = vector.load %arg2[%c0_17, %c1_18, %c0_19, %c0_20] : memref<2x3x28x140xf32, #tpu.memory_space<vmem>>, vector<1x1x28x140xf32>
    %13 = vector.shape_cast %12 : vector<1x1x28x140xf32> to vector<28x140xf32>
    %cst_21 = arith.constant dense<0.000000e+00> : vector<28x140xf32>
    %14 = tpu.matmul %11, %13, %cst_21 {dimension_numbers = #tpu.dot_dimension_numbers<[1], [0], [0], [1], [0, 0, 1, 1], [], []>} : vector<28x28xf32>, vector<28x140xf32>, vector<28x140xf32> -> vector<28x140xf32>
    %15 = arith.addf %10, %14 : vector<28x140xf32>
    %c2 = arith.constant 2 : index
    %c0_22 = arith.constant 0 : index
    %16 = vector.load %arg11[%c2, %c0_22] : memref<30x28xf32, #tpu.memory_space<vmem>>, vector<28x28xf32>
    %c0_23 = arith.constant 0 : index
    %c2_24 = arith.constant 2 : index
    %c0_25 = arith.constant 0 : index
    %c0_26 = arith.constant 0 : index
    %17 = vector.load %arg2[%c0_23, %c2_24, %c0_25, %c0_26] : memref<2x3x28x140xf32, #tpu.memory_space<vmem>>, vector<1x1x28x140xf32>
    %18 = vector.shape_cast %17 : vector<1x1x28x140xf32> to vector<28x140xf32>
    %cst_27 = arith.constant dense<0.000000e+00> : vector<28x140xf32>
    %19 = tpu.matmul %16, %18, %cst_27 {dimension_numbers = #tpu.dot_dimension_numbers<[1], [0], [0], [1], [0, 0, 1, 1], [], []>} : vector<28x28xf32>, vector<28x140xf32>, vector<28x140xf32> -> vector<28x140xf32>
    %20 = arith.addf %15, %19 : vector<28x140xf32>
    %c0_28 = arith.constant 0 : index
    %c0_29 = arith.constant 0 : index
    %21 = vector.load %arg11[%c0_28, %c0_29] : memref<30x28xf32, #tpu.memory_space<vmem>>, vector<28x28xf32>
    %c1_30 = arith.constant 1 : index
    %c0_31 = arith.constant 0 : index
    %c0_32 = arith.constant 0 : index
    %c0_33 = arith.constant 0 : index
    %22 = vector.load %arg2[%c1_30, %c0_31, %c0_32, %c0_33] : memref<2x3x28x140xf32, #tpu.memory_space<vmem>>, vector<1x1x28x140xf32>
    %23 = vector.shape_cast %22 : vector<1x1x28x140xf32> to vector<28x140xf32>
    %cst_34 = arith.constant dense<0.000000e+00> : vector<28x140xf32>
    %24 = tpu.matmul %21, %23, %cst_34 {dimension_numbers = #tpu.dot_dimension_numbers<[1], [0], [0], [1], [0, 0, 1, 1], [], []>} : vector<28x28xf32>, vector<28x140xf32>, vector<28x140xf32> -> vector<28x140xf32>
    %c1_35 = arith.constant 1 : index
    %c0_36 = arith.constant 0 : index
    %25 = vector.load %arg11[%c1_35, %c0_36] : memref<30x28xf32, #tpu.memory_space<vmem>>, vector<28x28xf32>
    %c1_37 = arith.constant 1 : index
    %c1_38 = arith.constant 1 : index
    %c0_39 = arith.constant 0 : index
    %c0_40 = arith.constant 0 : index
    %26 = vector.load %arg2[%c1_37, %c1_38, %c0_39, %c0_40] : memref<2x3x28x140xf32, #tpu.memory_space<vmem>>, vector<1x1x28x140xf32>
    %27 = vector.shape_cast %26 : vector<1x1x28x140xf32> to vector<28x140xf32>
    %cst_41 = arith.constant dense<0.000000e+00> : vector<28x140xf32>
    %28 = tpu.matmul %25, %27, %cst_41 {dimension_numbers = #tpu.dot_dimension_numbers<[1], [0], [0], [1], [0, 0, 1, 1], [], []>} : vector<28x28xf32>, vector<28x140xf32>, vector<28x140xf32> -> vector<28x140xf32>
    %29 = arith.addf %24, %28 : vector<28x140xf32>
    %c2_42 = arith.constant 2 : index
    %c0_43 = arith.constant 0 : index
    %30 = vector.load %arg11[%c2_42, %c0_43] : memref<30x28xf32, #tpu.memory_space<vmem>>, vector<28x28xf32>
    %c1_44 = arith.constant 1 : index
    %c2_45 = arith.constant 2 : index
    %c0_46 = arith.constant 0 : index
    %c0_47 = arith.constant 0 : index
    %31 = vector.load %arg2[%c1_44, %c2_45, %c0_46, %c0_47] : memref<2x3x28x140xf32, #tpu.memory_space<vmem>>, vector<1x1x28x140xf32>
    %32 = vector.shape_cast %31 : vector<1x1x28x140xf32> to vector<28x140xf32>
    %cst_48 = arith.constant dense<0.000000e+00> : vector<28x140xf32>
    %33 = tpu.matmul %30, %32, %cst_48 {dimension_numbers = #tpu.dot_dimension_numbers<[1], [0], [0], [1], [0, 0, 1, 1], [], []>} : vector<28x28xf32>, vector<28x140xf32>, vector<28x140xf32> -> vector<28x140xf32>
    %34 = arith.addf %29, %33 : vector<28x140xf32>
    %35 = arith.maximumf %20, %34 : vector<28x140xf32>
    %c0_49 = arith.constant 0 : index
    %c0_50 = arith.constant 0 : index
    %c0_51 = arith.constant 0 : index
    %36 = vector.load %arg4[%c0_49, %c0_50, %c0_51] : memref<2x14x28xf32, #tpu.memory_space<vmem>>, vector<1x14x28xf32>
    %37 = vector.shape_cast %36 : vector<1x14x28xf32> to vector<14x28xf32>
    %cst_52 = arith.constant dense<0.000000e+00> : vector<14x140xf32>
    %38 = tpu.matmul %37, %35, %cst_52 {dimension_numbers = #tpu.dot_dimension_numbers<[1], [0], [0], [1], [0, 0, 1, 1], [], []>} : vector<14x28xf32>, vector<28x140xf32>, vector<14x140xf32> -> vector<14x140xf32>
    %c1_53 = arith.constant 1 : index
    %c0_54 = arith.constant 0 : index
    %c0_55 = arith.constant 0 : index
    %39 = vector.load %arg4[%c1_53, %c0_54, %c0_55] : memref<2x14x28xf32, #tpu.memory_space<vmem>>, vector<1x14x28xf32>
    %40 = vector.shape_cast %39 : vector<1x14x28xf32> to vector<14x28xf32>
    %cst_56 = arith.constant dense<0.000000e+00> : vector<14x140xf32>
    %41 = tpu.matmul %40, %35, %cst_56 {dimension_numbers = #tpu.dot_dimension_numbers<[1], [0], [0], [1], [0, 0, 1, 1], [], []>} : vector<14x28xf32>, vector<28x140xf32>, vector<14x140xf32> -> vector<14x140xf32>
    %42 = arith.maximumf %38, %41 : vector<14x140xf32>
    %c0_57 = arith.constant 0 : index
    %c0_58 = arith.constant 0 : index
    %43 = vector.load %arg3[%c0_57, %c0_58] : memref<1x140xf32, #tpu.memory_space<vmem>>, vector<1x140xf32>
    %44 = vector.broadcast %43 : vector<1x140xf32> to vector<14x140xf32>
    %45 = arith.addf %42, %44 : vector<14x140xf32>
    %cst_59 = arith.constant 0.000000e+00 : f32
    %46 = vector.broadcast %cst_59 : f32 to vector<14x140xf32>
    %47 = arith.maximumf %45, %46 : vector<14x140xf32>
    %cst_60 = arith.constant 0.000000e+00 : f32
    %48 = vector.broadcast %cst_60 : f32 to vector<1x140xf32>
    %c0_61 = arith.constant 0 : index
    %c0_62 = arith.constant 0 : index
    %49 = vector.load %arg12[%c0_61, %c0_62] : memref<16x140xf32, #tpu.memory_space<vmem>>, vector<1x140xf32>
    tpu.vector_store %arg12[%c0_61, %c0_62], %48 {strides = array<i32>} : memref<16x140xf32, #tpu.memory_space<vmem>>, vector<1x140xf32>,
    %cst_63 = arith.constant 0.000000e+00 : f32
    %50 = vector.broadcast %cst_63 : f32 to vector<1x140xf32>
    %c15 = arith.constant 15 : index
    %c0_64 = arith.constant 0 : index
    %51 = vector.load %arg12[%c15, %c0_64] : memref<16x140xf32, #tpu.memory_space<vmem>>, vector<1x140xf32>
    tpu.vector_store %arg12[%c15, %c0_64], %50 {strides = array<i32>} : memref<16x140xf32, #tpu.memory_space<vmem>>, vector<1x140xf32>,
    %c1_65 = arith.constant 1 : index
    %c0_66 = arith.constant 0 : index
    %52 = vector.load %arg12[%c1_65, %c0_66] : memref<16x140xf32, #tpu.memory_space<vmem>>, vector<14x140xf32>
    tpu.vector_store %arg12[%c1_65, %c0_66], %47 {strides = array<i32>} : memref<16x140xf32, #tpu.memory_space<vmem>>, vector<14x140xf32>,
    %c0_67 = arith.constant 0 : index
    %c0_68 = arith.constant 0 : index
    %53 = vector.load %arg12[%c0_67, %c0_68] : memref<16x140xf32, #tpu.memory_space<vmem>>, vector<14x140xf32>
    %c0_69 = arith.constant 0 : index
    %c0_70 = arith.constant 0 : index
    %c0_71 = arith.constant 0 : index
    %c0_72 = arith.constant 0 : index
    %54 = vector.load %arg5[%c0_69, %c0_70, %c0_71, %c0_72] : memref<2x3x140x140xf32, #tpu.memory_space<vmem>>, vector<1x1x140x140xf32>
    %55 = vector.shape_cast %54 : vector<1x1x140x140xf32> to vector<140x140xf32>
    %cst_73 = arith.constant dense<0.000000e+00> : vector<14x140xf32>
    %56 = tpu.matmul %53, %55, %cst_73 {dimension_numbers = #tpu.dot_dimension_numbers<[1], [0], [0], [1], [0, 0, 1, 1], [], []>} : vector<14x140xf32>, vector<140x140xf32>, vector<14x140xf32> -> vector<14x140xf32>
    %c1_74 = arith.constant 1 : index
    %c0_75 = arith.constant 0 : index
    %57 = vector.load %arg12[%c1_74, %c0_75] : memref<16x140xf32, #tpu.memory_space<vmem>>, vector<14x140xf32>
    %c0_76 = arith.constant 0 : index
    %c1_77 = arith.constant 1 : index
    %c0_78 = arith.constant 0 : index
    %c0_79 = arith.constant 0 : index
    %58 = vector.load %arg5[%c0_76, %c1_77, %c0_78, %c0_79] : memref<2x3x140x140xf32, #tpu.memory_space<vmem>>, vector<1x1x140x140xf32>
    %59 = vector.shape_cast %58 : vector<1x1x140x140xf32> to vector<140x140xf32>
    %cst_80 = arith.constant dense<0.000000e+00> : vector<14x140xf32>
    %60 = tpu.matmul %57, %59, %cst_80 {dimension_numbers = #tpu.dot_dimension_numbers<[1], [0], [0], [1], [0, 0, 1, 1], [], []>} : vector<14x140xf32>, vector<140x140xf32>, vector<14x140xf32> -> vector<14x140xf32>
    %61 = arith.addf %56, %60 : vector<14x140xf32>
    %c2_81 = arith.constant 2 : index
    %c0_82 = arith.constant 0 : index
    %62 = vector.load %arg12[%c2_81, %c0_82] : memref<16x140xf32, #tpu.memory_space<vmem>>, vector<14x140xf32>
    %c0_83 = arith.constant 0 : index
    %c2_84 = arith.constant 2 : index
    %c0_85 = arith.constant 0 : index
    %c0_86 = arith.constant 0 : index
    %63 = vector.load %arg5[%c0_83, %c2_84, %c0_85, %c0_86] : memref<2x3x140x140xf32, #tpu.memory_space<vmem>>, vector<1x1x140x140xf32>
    %64 = vector.shape_cast %63 : vector<1x1x140x140xf32> to vector<140x140xf32>
    %cst_87 = arith.constant dense<0.000000e+00> : vector<14x140xf32>
    %65 = tpu.matmul %62, %64, %cst_87 {dimension_numbers = #tpu.dot_dimension_numbers<[1], [0], [0], [1], [0, 0, 1, 1], [], []>} : vector<14x140xf32>, vector<140x140xf32>, vector<14x140xf32> -> vector<14x140xf32>
    %66 = arith.addf %61, %65 : vector<14x140xf32>
    %c0_88 = arith.constant 0 : index
    %c0_89 = arith.constant 0 : index
    %67 = vector.load %arg12[%c0_88, %c0_89] : memref<16x140xf32, #tpu.memory_space<vmem>>, vector<14x140xf32>
    %c1_90 = arith.constant 1 : index
    %c0_91 = arith.constant 0 : index
    %c0_92 = arith.constant 0 : index
    %c0_93 = arith.constant 0 : index
    %68 = vector.load %arg5[%c1_90, %c0_91, %c0_92, %c0_93] : memref<2x3x140x140xf32, #tpu.memory_space<vmem>>, vector<1x1x140x140xf32>
    %69 = vector.shape_cast %68 : vector<1x1x140x140xf32> to vector<140x140xf32>
    %cst_94 = arith.constant dense<0.000000e+00> : vector<14x140xf32>
    %70 = tpu.matmul %67, %69, %cst_94 {dimension_numbers = #tpu.dot_dimension_numbers<[1], [0], [0], [1], [0, 0, 1, 1], [], []>} : vector<14x140xf32>, vector<140x140xf32>, vector<14x140xf32> -> vector<14x140xf32>
    %c1_95 = arith.constant 1 : index
    %c0_96 = arith.constant 0 : index
    %71 = vector.load %arg12[%c1_95, %c0_96] : memref<16x140xf32, #tpu.memory_space<vmem>>, vector<14x140xf32>
    %c1_97 = arith.constant 1 : index
    %c1_98 = arith.constant 1 : index
    %c0_99 = arith.constant 0 : index
    %c0_100 = arith.constant 0 : index
    %72 = vector.load %arg5[%c1_97, %c1_98, %c0_99, %c0_100] : memref<2x3x140x140xf32, #tpu.memory_space<vmem>>, vector<1x1x140x140xf32>
    %73 = vector.shape_cast %72 : vector<1x1x140x140xf32> to vector<140x140xf32>
    %cst_101 = arith.constant dense<0.000000e+00> : vector<14x140xf32>
    %74 = tpu.matmul %71, %73, %cst_101 {dimension_numbers = #tpu.dot_dimension_numbers<[1], [0], [0], [1], [0, 0, 1, 1], [], []>} : vector<14x140xf32>, vector<140x140xf32>, vector<14x140xf32> -> vector<14x140xf32>
    %75 = arith.addf %70, %74 : vector<14x140xf32>
    %c2_102 = arith.constant 2 : index
    %c0_103 = arith.constant 0 : index
    %76 = vector.load %arg12[%c2_102, %c0_103] : memref<16x140xf32, #tpu.memory_space<vmem>>, vector<14x140xf32>
    %c1_104 = arith.constant 1 : index
    %c2_105 = arith.constant 2 : index
    %c0_106 = arith.constant 0 : index
    %c0_107 = arith.constant 0 : index
    %77 = vector.load %arg5[%c1_104, %c2_105, %c0_106, %c0_107] : memref<2x3x140x140xf32, #tpu.memory_space<vmem>>, vector<1x1x140x140xf32>
    %78 = vector.shape_cast %77 : vector<1x1x140x140xf32> to vector<140x140xf32>
    %cst_108 = arith.constant dense<0.000000e+00> : vector<14x140xf32>
    %79 = tpu.matmul %76, %78, %cst_108 {dimension_numbers = #tpu.dot_dimension_numbers<[1], [0], [0], [1], [0, 0, 1, 1], [], []>} : vector<14x140xf32>, vector<140x140xf32>, vector<14x140xf32> -> vector<14x140xf32>
    %80 = arith.addf %75, %79 : vector<14x140xf32>
    %81 = arith.maximumf %66, %80 : vector<14x140xf32>
    %c0_109 = arith.constant 0 : index
    %c0_110 = arith.constant 0 : index
    %c0_111 = arith.constant 0 : index
    %82 = vector.load %arg7[%c0_109, %c0_110, %c0_111] : memref<2x7x14xf32, #tpu.memory_space<vmem>>, vector<1x7x14xf32>
    %83 = vector.shape_cast %82 : vector<1x7x14xf32> to vector<7x14xf32>
    %cst_112 = arith.constant dense<0.000000e+00> : vector<7x140xf32>
    %84 = tpu.matmul %83, %81, %cst_112 {dimension_numbers = #tpu.dot_dimension_numbers<[1], [0], [0], [1], [0, 0, 1, 1], [], []>} : vector<7x14xf32>, vector<14x140xf32>, vector<7x140xf32> -> vector<7x140xf32>
    %c1_113 = arith.constant 1 : index
    %c0_114 = arith.constant 0 : index
    %c0_115 = arith.constant 0 : index
    %85 = vector.load %arg7[%c1_113, %c0_114, %c0_115] : memref<2x7x14xf32, #tpu.memory_space<vmem>>, vector<1x7x14xf32>
    %86 = vector.shape_cast %85 : vector<1x7x14xf32> to vector<7x14xf32>
    %cst_116 = arith.constant dense<0.000000e+00> : vector<7x140xf32>
    %87 = tpu.matmul %86, %81, %cst_116 {dimension_numbers = #tpu.dot_dimension_numbers<[1], [0], [0], [1], [0, 0, 1, 1], [], []>} : vector<7x14xf32>, vector<14x140xf32>, vector<7x140xf32> -> vector<7x140xf32>
    %88 = arith.maximumf %84, %87 : vector<7x140xf32>
    %c0_117 = arith.constant 0 : index
    %c0_118 = arith.constant 0 : index
    %89 = vector.load %arg6[%c0_117, %c0_118] : memref<1x140xf32, #tpu.memory_space<vmem>>, vector<1x140xf32>
    %90 = vector.broadcast %89 : vector<1x140xf32> to vector<7x140xf32>
    %91 = arith.addf %88, %90 : vector<7x140xf32>
    %cst_119 = arith.constant 0.000000e+00 : f32
    %92 = vector.broadcast %cst_119 : f32 to vector<7x140xf32>
    %93 = arith.maximumf %91, %92 : vector<7x140xf32>
    %c0_120 = arith.constant 0 : index
    %c0_121 = arith.constant 0 : index
    %94 = vector.load %arg9[%c0_120, %c0_121] : memref<1x128xf32, #tpu.memory_space<vmem>>, vector<1x128xf32>
    %95 = vector.extract_strided_slice %93 {offsets = [0, 0], sizes = [1, 140], strides = [1, 1]} : vector<7x140xf32> to vector<1x140xf32>
    %c0_122 = arith.constant 0 : index
    %c0_123 = arith.constant 0 : index
    %c0_124 = arith.constant 0 : index
    %96 = vector.load %arg8[%c0_122, %c0_123, %c0_124] : memref<7x140x128xf32, #tpu.memory_space<vmem>>, vector<1x140x128xf32>
    %97 = vector.shape_cast %96 : vector<1x140x128xf32> to vector<140x128xf32>
    %cst_125 = arith.constant dense<0.000000e+00> : vector<1x128xf32>
    %98 = tpu.matmul %95, %97, %cst_125 {dimension_numbers = #tpu.dot_dimension_numbers<[1], [0], [0], [1], [0, 0, 1, 1], [], []>} : vector<1x140xf32>, vector<140x128xf32>, vector<1x128xf32> -> vector<1x128xf32>
    %99 = arith.addf %94, %98 : vector<1x128xf32>
    %100 = vector.extract_strided_slice %93 {offsets = [1, 0], sizes = [1, 140], strides = [1, 1]} : vector<7x140xf32> to vector<1x140xf32>
    %c1_126 = arith.constant 1 : index
    %c0_127 = arith.constant 0 : index
    %c0_128 = arith.constant 0 : index
    %101 = vector.load %arg8[%c1_126, %c0_127, %c0_128] : memref<7x140x128xf32, #tpu.memory_space<vmem>>, vector<1x140x128xf32>
    %102 = vector.shape_cast %101 : vector<1x140x128xf32> to vector<140x128xf32>
    %cst_129 = arith.constant dense<0.000000e+00> : vector<1x128xf32>
    %103 = tpu.matmul %100, %102, %cst_129 {dimension_numbers = #tpu.dot_dimension_numbers<[1], [0], [0], [1], [0, 0, 1, 1], [], []>} : vector<1x140xf32>, vector<140x128xf32>, vector<1x128xf32> -> vector<1x128xf32>
    %104 = arith.addf %99, %103 : vector<1x128xf32>
    %105 = vector.extract_strided_slice %93 {offsets = [2, 0], sizes = [1, 140], strides = [1, 1]} : vector<7x140xf32> to vector<1x140xf32>
    %c2_130 = arith.constant 2 : index
    %c0_131 = arith.constant 0 : index
    %c0_132 = arith.constant 0 : index
    %106 = vector.load %arg8[%c2_130, %c0_131, %c0_132] : memref<7x140x128xf32, #tpu.memory_space<vmem>>, vector<1x140x128xf32>
    %107 = vector.shape_cast %106 : vector<1x140x128xf32> to vector<140x128xf32>
    %cst_133 = arith.constant dense<0.000000e+00> : vector<1x128xf32>
    %108 = tpu.matmul %105, %107, %cst_133 {dimension_numbers = #tpu.dot_dimension_numbers<[1], [0], [0], [1], [0, 0, 1, 1], [], []>} : vector<1x140xf32>, vector<140x128xf32>, vector<1x128xf32> -> vector<1x128xf32>
    %109 = arith.addf %104, %108 : vector<1x128xf32>
    %110 = vector.extract_strided_slice %93 {offsets = [3, 0], sizes = [1, 140], strides = [1, 1]} : vector<7x140xf32> to vector<1x140xf32>
    %c3 = arith.constant 3 : index
    %c0_134 = arith.constant 0 : index
    %c0_135 = arith.constant 0 : index
    %111 = vector.load %arg8[%c3, %c0_134, %c0_135] : memref<7x140x128xf32, #tpu.memory_space<vmem>>, vector<1x140x128xf32>
    %112 = vector.shape_cast %111 : vector<1x140x128xf32> to vector<140x128xf32>
    %cst_136 = arith.constant dense<0.000000e+00> : vector<1x128xf32>
    %113 = tpu.matmul %110, %112, %cst_136 {dimension_numbers = #tpu.dot_dimension_numbers<[1], [0], [0], [1], [0, 0, 1, 1], [], []>} : vector<1x140xf32>, vector<140x128xf32>, vector<1x128xf32> -> vector<1x128xf32>
    %114 = arith.addf %109, %113 : vector<1x128xf32>
    %115 = vector.extract_strided_slice %93 {offsets = [4, 0], sizes = [1, 140], strides = [1, 1]} : vector<7x140xf32> to vector<1x140xf32>
    %c4 = arith.constant 4 : index
    %c0_137 = arith.constant 0 : index
    %c0_138 = arith.constant 0 : index
    %116 = vector.load %arg8[%c4, %c0_137, %c0_138] : memref<7x140x128xf32, #tpu.memory_space<vmem>>, vector<1x140x128xf32>
    %117 = vector.shape_cast %116 : vector<1x140x128xf32> to vector<140x128xf32>
    %cst_139 = arith.constant dense<0.000000e+00> : vector<1x128xf32>
    %118 = tpu.matmul %115, %117, %cst_139 {dimension_numbers = #tpu.dot_dimension_numbers<[1], [0], [0], [1], [0, 0, 1, 1], [], []>} : vector<1x140xf32>, vector<140x128xf32>, vector<1x128xf32> -> vector<1x128xf32>
    %119 = arith.addf %114, %118 : vector<1x128xf32>
    %120 = vector.extract_strided_slice %93 {offsets = [5, 0], sizes = [1, 140], strides = [1, 1]} : vector<7x140xf32> to vector<1x140xf32>
    %c5 = arith.constant 5 : index
    %c0_140 = arith.constant 0 : index
    %c0_141 = arith.constant 0 : index
    %121 = vector.load %arg8[%c5, %c0_140, %c0_141] : memref<7x140x128xf32, #tpu.memory_space<vmem>>, vector<1x140x128xf32>
    %122 = vector.shape_cast %121 : vector<1x140x128xf32> to vector<140x128xf32>
    %cst_142 = arith.constant dense<0.000000e+00> : vector<1x128xf32>
    %123 = tpu.matmul %120, %122, %cst_142 {dimension_numbers = #tpu.dot_dimension_numbers<[1], [0], [0], [1], [0, 0, 1, 1], [], []>} : vector<1x140xf32>, vector<140x128xf32>, vector<1x128xf32> -> vector<1x128xf32>
    %124 = arith.addf %119, %123 : vector<1x128xf32>
    %125 = vector.extract_strided_slice %93 {offsets = [6, 0], sizes = [1, 140], strides = [1, 1]} : vector<7x140xf32> to vector<1x140xf32>
    %c6 = arith.constant 6 : index
    %c0_143 = arith.constant 0 : index
    %c0_144 = arith.constant 0 : index
    %126 = vector.load %arg8[%c6, %c0_143, %c0_144] : memref<7x140x128xf32, #tpu.memory_space<vmem>>, vector<1x140x128xf32>
    %127 = vector.shape_cast %126 : vector<1x140x128xf32> to vector<140x128xf32>
    %cst_145 = arith.constant dense<0.000000e+00> : vector<1x128xf32>
    %128 = tpu.matmul %125, %127, %cst_145 {dimension_numbers = #tpu.dot_dimension_numbers<[1], [0], [0], [1], [0, 0, 1, 1], [], []>} : vector<1x140xf32>, vector<140x128xf32>, vector<1x128xf32> -> vector<1x128xf32>
    %129 = arith.addf %124, %128 : vector<1x128xf32>
    %c0_146 = arith.constant 0 : index
    %c0_147 = arith.constant 0 : index
    %c0_148 = arith.constant 0 : index
    %130 = vector.load %arg10[%c0_146, %c0_147, %c0_148] : memref<1x1x128xf32, #tpu.memory_space<vmem>>, vector<1x1x128xf32>
    %131 = vector.shape_cast %130 : vector<1x1x128xf32> to vector<1x128xf32>
    %132 = vector.shape_cast %129 : vector<1x128xf32> to vector<1x1x128xf32>
    tpu.vector_store %arg10[%c0_146, %c0_147, %c0_148], %132 {strides = array<i32>} : memref<1x1x128xf32, #tpu.memory_space<vmem>>, vector<1x1x128xf32>,
    return
  }
  func.func @transform_0(%arg0: i32) -> (i32, i32, i32, i32) {
    %c0_i32 = arith.constant 0 : i32
    %c0_i32_0 = arith.constant 0 : i32
    %c0_i32_1 = arith.constant 0 : i32
    %c0_i32_2 = arith.constant 0 : i32
    return %arg0, %c0_i32, %c0_i32_0, %c0_i32_1 : i32, i32, i32, i32
  }
  func.func @transform_1(%arg0: i32) -> (i32, i32, i32, i32) {
    %c0_i32 = arith.constant 0 : i32
    %c0_i32_0 = arith.constant 0 : i32
    %c0_i32_1 = arith.constant 0 : i32
    %c0_i32_2 = arith.constant 0 : i32
    %c0_i32_3 = arith.constant 0 : i32
    return %c0_i32, %c0_i32_0, %c0_i32_1, %c0_i32_2 : i32, i32, i32, i32
  }
  func.func @transform_2(%arg0: i32) -> (i32, i32) {
    %c0_i32 = arith.constant 0 : i32
    %c0_i32_0 = arith.constant 0 : i32
    %c0_i32_1 = arith.constant 0 : i32
    return %c0_i32, %c0_i32_0 : i32, i32
  }
  func.func @transform_3(%arg0: i32) -> (i32, i32, i32) {
    %c0_i32 = arith.constant 0 : i32
    %c0_i32_0 = arith.constant 0 : i32
    %c0_i32_1 = arith.constant 0 : i32
    %c0_i32_2 = arith.constant 0 : i32
    return %c0_i32, %c0_i32_0, %c0_i32_1 : i32, i32, i32
  }
  func.func @transform_4(%arg0: i32) -> (i32, i32, i32, i32) {
    %c0_i32 = arith.constant 0 : i32
    %c0_i32_0 = arith.constant 0 : i32
    %c0_i32_1 = arith.constant 0 : i32
    %c0_i32_2 = arith.constant 0 : i32
    %c0_i32_3 = arith.constant 0 : i32
    return %c0_i32, %c0_i32_0, %c0_i32_1, %c0_i32_2 : i32, i32, i32, i32
  }
  func.func @transform_5(%arg0: i32) -> (i32, i32) {
    %c0_i32 = arith.constant 0 : i32
    %c0_i32_0 = arith.constant 0 : i32
    %c0_i32_1 = arith.constant 0 : i32
    return %c0_i32, %c0_i32_0 : i32, i32
  }
  func.func @transform_6(%arg0: i32) -> (i32, i32, i32) {
    %c0_i32 = arith.constant 0 : i32
    %c0_i32_0 = arith.constant 0 : i32
    %c0_i32_1 = arith.constant 0 : i32
    %c0_i32_2 = arith.constant 0 : i32
    return %c0_i32, %c0_i32_0, %c0_i32_1 : i32, i32, i32
  }
  func.func @transform_7(%arg0: i32) -> (i32, i32, i32) {
    %c0_i32 = arith.constant 0 : i32
    %c0_i32_0 = arith.constant 0 : i32
    %c0_i32_1 = arith.constant 0 : i32
    %c0_i32_2 = arith.constant 0 : i32
    return %c0_i32, %c0_i32_0, %c0_i32_1 : i32, i32, i32
  }
  func.func @transform_8(%arg0: i32) -> (i32, i32) {
    %c0_i32 = arith.constant 0 : i32
    %c0_i32_0 = arith.constant 0 : i32
    %c0_i32_1 = arith.constant 0 : i32
    return %c0_i32, %c0_i32_0 : i32, i32
  }
  func.func @transform_9(%arg0: i32) -> (i32, i32, i32) {
    %c0_i32 = arith.constant 0 : i32
    %c0_i32_0 = arith.constant 0 : i32
    %c0_i32_1 = arith.constant 0 : i32
    return %arg0, %c0_i32, %c0_i32_0 : i32, i32, i32
  }
}

</mosaic_0001>

<bundles_post_ra>
// kernel: net_forward_impl.1
= control target key start
LH: loop header
LB: loop body
LE: loop exit
PB: predicated region body
PF: predicated region fallthrough
CT: control target
= control target key end

     0   :  { %14 = vsyncpa [#allocation5], 0  ;;  %s5770_s0 = inlined_call_operand.vmem [shape: f32[2,1,28,28], index: 0, kind: input, shape index: {}]   ;;  %s5771_s1 = inlined_call_operand.vmem [shape: f32[2,3,28,140], index: 1, kind: input, shape index: {}]   ;;  %s5772_s2 = inlined_call_operand.vmem [shape: f32[1,140], index: 2, kind: input, shape index: {}]   ;;  %s5773_s3 = inlined_call_operand.vmem [shape: f32[2,14,28], index: 3, kind: input, shape index: {}]   ;;  %s5774_s4 = inlined_call_operand.vmem [shape: f32[2,3,140,140], index: 4, kind: input, shape index: {}]   ;;  %s5775_s5 = inlined_call_operand.vmem [shape: f32[1,140], index: 5, kind: input, shape index: {}]   ;;  %s5776_s6 = inlined_call_operand.vmem [shape: f32[2,7,14], index: 6, kind: input, shape index: {}]   ;;  %s5777_s7 = inlined_call_operand.vmem [shape: f32[7,140,128], index: 7, kind: input, shape index: {}]   ;;  %s5778_s8 = inlined_call_operand.vmem [shape: f32[1,128], index: 8, kind: input, shape index: {}]   ;;  %s5779_s9 = inlined_call_operand.hbm [shape: f32[2,1,128], index: 9, kind: output, shape index: {}]  }
   0x1   :  { %16 = vsyncpa [#allocation5 + $0x1], 0  ;;  %s4150_s30 = smov 0   ;;  %s4152_s10 = smov 0  }
   0x2   :  { %s4154_s11 = smov 0   ;;  %s4156_s12 = smov 0  }
   0x3 LB: > { %s4171_s13 = sadd.s32 4294967295, %s4094_s12   ;;  %s2984_s14 = sadd.s32 4294967294, %s4094_s12   ;;  %s4094_s12 = sphi %s4156_s12, %s5787_s12   ;;  %s4090_s11 = sphi %s4154_s11, %s5786_s11   ;;  %s4086_s10 = sphi %s4152_s10, %s5785_s10   ;;  %s4082_s30 = sphi %s4150_s30, %s5784_s30  }
   0x4   : > { %s4175_s15 = sadd.s32 1, %s4094_s12   ;;  %s223_s16 = sadd.s32 1, %s4090_s11 }
   0x5   : > { %s220_s17 = ssub.s32 %s4094_s12, %s4175_s15  ;;  %p233_p0 = scmp.ne.s32.totalorder %s4090_s11, %s4086_s10 }
   0x6   : > { %p221_p1 = scmp.eq.s32.totalorder %s220_s17, 0  ;;  %p234_p2 = scmp.eq.s32.totalorder %s4171_s13, 1 }
   0x7   : > { %p239_p3 = scmp.ne.s32.totalorder %s4086_s10, %s4082_s30  ;;  %p240_p4 = scmp.eq.s32.totalorder %s2984_s14, 1 }
   0x8   : > { %s4186_s18 = scalar_select %p221_p1, %s4090_s11, %s223_s16  }
   0x9   : > { %p4188_p5 = por %p234_p2, %p233_p0  ;;  %p4192_p6 = por %p240_p4, %p239_p3 }
   0xa   : > { %p2987_p7 = scmp.ge.s32.totalorder %s4094_s12, 1  ;;  %p290_p8 = scmp.lt.s32.totalorder %s4094_s12, 3 }
   0xc   : > { %p291_p9 = pnand %p2987_p7, %p290_p8 }
   0xd   : > { %v2991_v0 = vld [vmem:[%s5771_s1 + $0x48] sm:$0xff] (!%p291_p9)  ;;  %v2993_v1 = vld [vmem:[%s5771_s1 + $0x58] sm:$0xff] (!%p291_p9)  ;;  %vm380_vm0 = vcmask (!%p291_p9), 1043456   ;;  %v2990_v5 = vld [vmem:[%s5771_s1 + $0x40] sm:$0xff] (!%p291_p9)  ;;  %v4096_v7 = vmov (!%p291_p9), 0.0   ;;  %p325_p10 = scmp.lt.s32.totalorder (!%p291_p9), %s4171_s13, 1 }
   0xe   : > { %294 = sbr.rel (%p291_p9) target bundleno = 1622 (0x656), region = 56  ;;  %v348_v2 = vld [vmem:[%s5771_s1 + $0x8] sm:$0xff] (!%p291_p9)  ;;  %v3413_v3 = vpack.c.bf16 (!%p291_p9), %v2993_v1, %v2991_v0  ;;  %v350_v4 = vld [vmem:[%s5771_s1 + $0x18] sm:$0xff] (!%p291_p9)  ;;  %v2992_v6 = vld [vmem:[%s5771_s1 + $0x50] sm:$0xff] (!%p291_p9)  ;;  %451 = vmatprep.mubr.f32.mxu1 (!%p291_p9), %v4096_v7  ;;  %558 = vmatprep.mubr.f32.mxu0 (!%p291_p9), %v4096_v7  ;;  %vm330_vm1 = vcmask (!%p291_p9), 221184   ;;  %vm4097_vm2 = vmmov (!%p291_p9), 1  }
   0xf   : > { %v3423_v8 = vpack.c.bf16 (!%p291_p9), %v350_v4, %v348_v2  ;;  %v3415_v9 = vpack.c.bf16 (!%p291_p9), %v2992_v6, %v2990_v5  ;;  %v347_v10 = vld [vmem:[%s5771_s1] sm:$0xff] (!%p291_p9)  ;;  %v349_v11 = vld [vmem:[%s5771_s1 + $0x10] sm:$0xff] (!%p291_p9)  ;;  %v2995_v12 = vld [vmem:[%s5771_s1 + $0x68] sm:$0xff] (!%p291_p9)  ;;  %331 = vst.msk [vmem:[#allocation2] sm:$0x1] (!%p291_p9), %vm330_vm1, %v4096_v7  ;;  %vm337_vm4 = vcmask (!%p291_p9), 228352  }
  0x10   : > { %332 = vst.msk [vmem:[#allocation2 + $0x1d] sm:$0x1] (!%p291_p9), %vm330_vm1, %v4096_v7  ;;  %3414 = vmatprep.subr.bf16.mxu1 (!%p291_p9), %v3413_v3  ;;  %v3425_v13 = vpack.c.bf16 (!%p291_p9), %v349_v11, %v347_v10  ;;  %v2997_v14 = vld [vmem:[%s5771_s1 + $0x78] sm:$0xf] (!%p291_p9)  ;;  %vm4235_vm3 = vmpackc.low (!%p291_p9), %vm380_vm0, %vm4097_vm2  ;;  %v352_v16 = vld [vmem:[%s5771_s1 + $0x28] sm:$0xff] (!%p291_p9)  ;;  %vm341_vm5 = vcmask (!%p291_p9), 224256  }
  0x11   : > { %3424 = vmatprep.subr.bf16.mxu0 (!%p291_p9), %v3423_v8  ;;  %3416 = vmatpush1.bf16.msra.mxu1 (!%p291_p9), %v3415_v9  ;;  %v3417_v17 = vpack.c.bf16 (!%p291_p9), %v2997_v14, %v2995_v12  ;;  %v354_v18 = vld [vmem:[%s5771_s1 + $0x38] sm:$0xf] (!%p291_p9)  ;;  %v2994_v19 = vld [vmem:[%s5771_s1 + $0x60] sm:$0xff] (!%p291_p9)  ;;  %v2996_v20 = vld [vmem:[%s5771_s1 + $0x70] sm:$0xf] (!%p291_p9)  ;;  %vm1265_vm7 = vcmask (!%p291_p9), 97281  }
  0x12   : > { %3426 = vmatpush1.bf16.msra.mxu0 (!%p291_p9), %v3425_v13  ;;  %v3427_v21 = vpack.c.bf16 (!%p291_p9), %v354_v18, %v352_v16  ;;  %v3420_v22 = vpack.c.bf16 (!%p291_p9), %v2996_v20, %v2994_v19  ;;  %v351_v23 = vld [vmem:[%s5771_s1 + $0x20] sm:$0xff] (!%p291_p9)  ;;  %v353_v24 = vld [vmem:[%s5771_s1 + $0x30] sm:$0xf] (!%p291_p9)  ;;  %v3033_v25 = vld [vmem:[%s5771_s1 + $0x108] sm:$0xff] (!%p291_p9)  ;;  %vm1253_vm8 = vcmask (!%p291_p9), 1040384   ;;  %vm1268_vm9 = vcmask (!%p291_p9), 96256  }
  0x13   : > { %3419 = vmatprep.subr.msk.bf16.mxu1 (!%p291_p9), %vm4235_vm3, %v3417_v17  ;;  %v3430_v26 = vpack.c.bf16 (!%p291_p9), %v353_v24, %v351_v23  ;;  %v3035_v27 = vld [vmem:[%s5771_s1 + $0x118] sm:$0xff] (!%p291_p9)  ;;  %v3011_v32 = vld [vmem:[%s5771_s1 + $0x88] sm:$0xff] (!%p291_p9)  ;;  %v3032_v36 = vld [vmem:[%s5771_s1 + $0x100] sm:$0xff] (!%p291_p9)  ;;  %vm1355_vm10 = vcmask (!%p291_p9), 1046528   ;;  %vm1364_vm11 = vcmask (!%p291_p9), 97280   ;;  %vm1586_vm12 = vcmask (!%p291_p9), 1045504  }
  0x14   : > { %3429 = vmatprep.subr.msk.bf16.mxu0 (!%p291_p9), %vm4235_vm3, %v3427_v21  ;;  %v3443_v30 = vpack.c.bf16 (!%p291_p9), %v3035_v27, %v3033_v25  ;;  %v3013_v33 = vld [vmem:[%s5771_s1 + $0x98] sm:$0xff] (!%p291_p9)  ;;  %v3034_v37 = vld [vmem:[%s5771_s1 + $0x110] sm:$0xff] (!%p291_p9)  ;;  %v3010_v38 = vld [vmem:[%s5771_s1 + $0x80] sm:$0xff] (!%p291_p9)  ;;  %vm2055_vm14 = vcmask (!%p291_p9), 113664   ;;  %s3409_s22 = sshll.u32 (!%p291_p9), %s4171_s13, 4 }
  0x15   : > { %s326_s16 = scalar_select %p325_p10, %s4171_s13, 1  ;;  %3422 = vmatpush1.bf16.msk.msra.mxu1 %vm4235_vm3, %v3420_v22  ;;  %v3433_v34 = vpack.c.bf16 %v3013_v33, %v3011_v32  ;;  %v3012_v39 = vld [vmem:[%s5771_s1 + $0x90] sm:$0xff]  ;;  %v3015_v40 = vld [vmem:[%s5771_s1 + $0xa8] sm:$0xff]  ;;  %v3017_v41 = vld [vmem:[%s5771_s1 + $0xb8] sm:$0xf]  ;;  %v3445_v44 = vpack.c.bf16 %v3034_v37, %v3032_v36 }
  0x16   : > { %3432 = vmatpush1.bf16.msk.msra.mxu0 %vm4235_vm3, %v3430_v26  ;;  %3444 = vmatprep.subr.bf16.mxu1 %v3443_v30  ;;  %v3037_v42 = vld [vmem:[%s5771_s1 + $0x128] sm:$0xff]  ;;  %v3039_v43 = vld [vmem:[%s5771_s1 + $0x138] sm:$0xf]  ;;  %v3435_v45 = vpack.c.bf16 %v3012_v39, %v3010_v38  ;;  %v3014_v46 = vld [vmem:[%s5771_s1 + $0xa0] sm:$0xff]  ;;  %v3437_v51 = vpack.c.bf16 %v3017_v41, %v3015_v40  ;;  %s5728_s27 = scalar_lea.hbm %s5779_s9, %s3409_s22  ;;  %s4099_s13 = smov [#allocation4]  }
  0x17   : > { %s3412_s14 = sshll.u32 %s326_s16, 5  ;;  %3434 = vmatprep.subr.bf16.mxu0 %v3433_v34  ;;  %v3016_v47 = vld [vmem:[%s5771_s1 + $0xb0] sm:$0xf]  ;;  %v3036_v48 = vld [vmem:[%s5771_s1 + $0x120] sm:$0xff]  ;;  %v3447_v52 = vpack.c.bf16 %v3039_v43, %v3037_v42  ;;  %v3025_v54 = vld [vmem:[%s5771_s1 + $0xc8] sm:$0xff]  ;;  %s4036_s29 = sshll.u32 %s4099_s13, 4  ;;  %s4037_s29 = int_to_ptr.vmem [resolvable:$false] %s4036_s29 }
  0x18   : > { %s329_s24 = scalar_lea.vmem %s5770_s0, %s3412_s14  ;;  %v3038_v53 = vld [vmem:[%s5771_s1 + $0x130] sm:$0xf]  ;;  %v3027_v55 = vld [vmem:[%s5771_s1 + $0xd8] sm:$0xff]  ;;  %v3440_v58 = vpack.c.bf16 %v3016_v47, %v3014_v46  ;;  %v3024_v1 = vld [vmem:[%s5771_s1 + $0xc0] sm:$0xff]  ;;  %s323_s14 = sand.u32 1, %s4086_s10  }
  0x19   : > { %v333_v28 = vld [vmem:[%s329_s24] sm:$0xff]  ;;  %v334_v29 = vld [vmem:[%s329_s24 + $0x8] sm:$0xff]  ;;  %v335_v31 = vld [vmem:[%s329_s24 + $0x10] sm:$0xff]  ;;  %v3450_v59 = vpack.c.bf16 %v3038_v53, %v3036_v48  ;;  %v3453_v60 = vpack.c.bf16 %v3027_v55, %v3025_v54  ;;  %s324_s23 = scalar_lea.vmem [#allocation4], %s323_s14  ;;  %s4038_s17 = scalar_lea.vmem %s4037_s29, 32 }
  0x1a   : > { %338 = vst.msk [vmem:[#allocation2 + $0x1] sm:$0xff] %vm337_vm4, %v333_v28  ;;  %339 = vst.msk [vmem:[#allocation2 + $0x9] sm:$0xff] %vm337_vm4, %v334_v29  ;;  %v336_v35 = vld [vmem:[%s329_s24 + $0x18] sm:$0xf]  ;;  %v3026_v2 = vld [vmem:[%s5771_s1 + $0xd0] sm:$0xff]  ;;  %s2929_s25 = sshll.u32 %s324_s23, 4  ;;  %s5730_s25 = int_to_ptr.vmem [resolvable:$true] %s2929_s25 }
  0x1b   : > { %340 = vst.msk [vmem:[#allocation2 + $0x11] sm:$0xff] %vm337_vm4, %v335_v31  ;;  %v3029_v3 = vld [vmem:[%s5771_s1 + $0xe8] sm:$0xff]  ;;  %v3031_v4 = vld [vmem:[%s5771_s1 + $0xf8] sm:$0xf]  ;;  %v3455_v6 = vpack.c.bf16 %v3026_v2, %v3024_v1  ;;  %v3028_v9 = vld [vmem:[%s5771_s1 + $0xe0] sm:$0xff]  ;;  %s2917_s24 = scalar_lea.sflag [#allocation5], %s323_s14  ;;  %p4039_p0 = scmp.lt.s32.totalorder %s5730_s25, %s4037_s29 }
  0x1c   : > { %342 = vst.msk [vmem:[#allocation2 + $0x19] sm:$0xf] %vm341_vm5, %v336_v35  ;;  %v3457_v8 = vpack.c.bf16 %v3031_v4, %v3029_v3  ;;  %v3030_v10 = vld [vmem:[%s5771_s1 + $0xf0] sm:$0xf]  ;;  %v3053_v11 = vld [vmem:[%s5771_s1 + $0x148] sm:$0xff]  ;;  %v3055_v12 = vld [vmem:[%s5771_s1 + $0x158] sm:$0xff] }
  0x1d   : > { %v3460_v14 = vpack.c.bf16 %v3030_v10, %v3028_v9  ;;  %v3463_v16 = vpack.c.bf16 %v3055_v12, %v3053_v11  ;;  %v3052_v19 = vld [vmem:[%s5771_s1 + $0x140] sm:$0xff]  ;;  %v3054_v20 = vld [vmem:[%s5771_s1 + $0x150] sm:$0xff]  ;;  %v3057_v21 = vld [vmem:[%s5771_s1 + $0x168] sm:$0xff]  ;;  %s4032_s28 = scalar_lea.vmem %s5730_s25, 16 }
  0x1e   : > { %v3059_v22 = vld [vmem:[%s5771_s1 + $0x178] sm:$0xf]  ;;  %v3465_v23 = vpack.c.bf16 %v3054_v20, %v3052_v19  ;;  %v3056_v25 = vld [vmem:[%s5771_s1 + $0x160] sm:$0xff]  ;;  %v3058_v26 = vld [vmem:[%s5771_s1 + $0x170] sm:$0xf]  ;;  %p4033_p11 = scmp.ne.s32.totalorder %s5730_s25, %s4032_s28  ;;  %p4040_p1 = scmp.lt.s32.totalorder %s4038_s17, %s4032_s28 }
  0x1f   : > { %v3467_v24 = vpack.c.bf16 %v3059_v22, %v3057_v21  ;;  %v3470_v27 = vpack.c.bf16 %v3058_v26, %v3056_v25  ;;  %v3076_v12 = vld [vmem:[%s5774_s4 + $0x120] sm:$0xff]  ;;  %v3082_v22 = vld [vmem:[%s5774_s4 + $0x150] sm:$0xff]  ;;  %v1040_v25 = vld [vmem:[%s5773_s3 + $0x8] sm:$0x3f] }
  0x20   : > { %v3080_v21 = vld [vmem:[%s5774_s4 + $0x140] sm:$0xff]  ;;  %v3071_v26 = vld [vmem:[%s5773_s3 + $0x18] sm:$0x3f]  ;;  %vm3722_vm13 = vmpackc.low %vm1586_vm12, %vm4097_vm2  ;;  %p4034_p12 = pnand %p4033_p11, %p4188_p5  ;;  %p4041_p2 = por %p4040_p1, %p4039_p0 }
  0x21   : > { %v355_v49 = vld [vmem:[#allocation2 + $0x1] sm:$0xff]  ;;  %v356_v56 = vld [vmem:[#allocation2 + $0x9] sm:$0xff] }
  0x22   : > { %v4319_v50 = vld [vmem:[#allocation2] sm:$0xff]  ;;  %3000 = vmatmul.mubr.msk.f32.vlgmr.msra.gmra.mrb[0].mxu1 %vm337_vm4, %v355_v49  ;;  %v4335_v57 = vld [vmem:[#allocation2 + $0x8] sm:$0xff]  ;;  %v357_v61 = vld [vmem:[#allocation2 + $0x11] sm:$0xff]  ;;  %p4035_p13 = pneg %p4034_p12 }
  0x23   : > { %3006 = vmatmul.mubr.msk.f32.vlgmr.msra.gmra.mrb[0].mxu0 %vm337_vm4, %v4319_v50  ;;  %457 = vmatprep.mubr.f32.mxu1 %v4096_v7  ;;  %v4346_v62 = vld [vmem:[#allocation2 + $0x10] sm:$0xff]  ;;  %v358_v63 = vld [vmem:[#allocation2 + $0x19] sm:$0xf]  ;;  %v583_v5 = vld [vmem:[#allocation2 + $0x2] sm:$0xff] }
  0x24   : > { %564 = vmatprep.mubr.f32.mxu0 %v4096_v7  ;;  %3446 = vmatpush1.bf16.msra.mxu1 %v3445_v44  ;;  %v346_v0 = vld [vmem:[#allocation2 + $0x18] sm:$0xf]  ;;  %v584_v13 = vld [vmem:[#allocation2 + $0xa] sm:$0xff]  ;;  %p4042_p3 = pnand %p4041_p2, %p4035_p13 }
  0x25   : > { %3436 = vmatpush1.bf16.msra.mxu0 %v3435_v45  ;;  %3449 = vmatprep.subr.msk.bf16.mxu1 %vm4235_vm3, %v3447_v52  ;;  %v585_v17 = vld [vmem:[#allocation2 + $0x12] sm:$0xff]  ;;  %v586_v18 = vld [vmem:[#allocation2 + $0x1a] sm:$0xf] }
  0x26   : > { %3439 = vmatprep.subr.msk.bf16.mxu0 %vm4235_vm3, %v3437_v51  ;;  %3001 = vmatmul.mubr.msk.f32.gmra.mrb[2].mxu1 %vm337_vm4, %v356_v56 }
  0x27   : > { %3007 = vmatmul.mubr.msk.f32.gmra.mrb[2].mxu0 %vm337_vm4, %v4335_v57  ;;  %463 = vmatprep.mubr.f32.mxu1 %v4096_v7 }
  0x28   : > { %570 = vmatprep.mubr.f32.mxu0 %v4096_v7  ;;  %3452 = vmatpush1.bf16.msk.msra.mxu1 %vm4235_vm3, %v3450_v59 }
  0x29   : > { %3442 = vmatpush1.bf16.msk.msra.mxu0 %vm4235_vm3, %v3440_v58  ;;  %3454 = vmatprep.subr.bf16.mxu1 %v3453_v60 }
  0x2a   : > { %3002 = vmatmul.mubr.msk.f32.gmra.mrb[4].mxu1 %vm337_vm4, %v357_v61 }
  0x2b   : > { %3008 = vmatmul.mubr.msk.f32.gmra.mrb[4].mxu0 %vm337_vm4, %v4346_v62  ;;  %469 = vmatprep.mubr.f32.mxu1 %v4096_v7 }
  0x2c   : > { %576 = vmatprep.mubr.f32.mxu0 %v4096_v7 }
  0x2e   : > { %3003 = vmatmul.mubr.msk.f32.gmra.mrb[6].mxu1 %vm337_vm4, %v358_v63 }
  0x2f   : > { %3009 = vmatmul.mubr.msk.f32.gmra.mrb[6].mxu0 %vm337_vm4, %v346_v0  ;;  %799 = vmatprep.mubr.f32.mxu1 %v4096_v7 }
  0x30   : > { %678 = vmatprep.mubr.f32.mxu0 %v4096_v7 }
  0x32   : > { %3042 = vmatmul.mubr.msk.f32.vlgmr.msra.gmra.mrb[8].mxu1 %vm337_vm4, %v355_v49 }
  0x33   : > { %3020 = vmatmul.mubr.msk.f32.vlgmr.msra.gmra.mrb[0].mxu0 %vm337_vm4, %v583_v5  ;;  %805 = vmatprep.mubr.f32.mxu1 %v4096_v7 }
  0x34   : > { %684 = vmatprep.mubr.f32.mxu0 %v4096_v7  ;;  %3456 = vmatpush1.bf16.msra.mxu1 %v3455_v6  ;;  %v3079_v6 = vld [vmem:[%s5774_s4 + $0x138] sm:$0xff] }
  0x35   : > { %3459 = vmatprep.subr.msk.bf16.mxu1 %vm4235_vm3, %v3457_v8 }
  0x36   : > { %3043 = vmatmul.mubr.msk.f32.gmra.mrb[10].mxu1 %vm337_vm4, %v356_v56 }
  0x37   : > { %3021 = vmatmul.mubr.msk.f32.gmra.mrb[2].mxu0 %vm337_vm4, %v584_v13  ;;  %811 = vmatprep.mubr.f32.mxu1 %v4096_v7 }
  0x38   : > { %690 = vmatprep.mubr.f32.mxu0 %v4096_v7  ;;  %3462 = vmatpush1.bf16.msk.msra.mxu1 %vm4235_vm3, %v3460_v14  ;;  %v3081_v14 = vld [vmem:[%s5774_s4 + $0x148] sm:$0xff] }
  0x39   : > { %3464 = vmatprep.subr.bf16.mxu1 %v3463_v16  ;;  %v3083_v16 = vld [vmem:[%s5774_s4 + $0x158] sm:$0xff] }
  0x3a   : > { %3044 = vmatmul.mubr.msk.f32.gmra.mrb[12].mxu1 %vm337_vm4, %v357_v61  ;;  %v3497_v20 = vpack.c.bf16 %v3083_v16, %v3081_v14 }
  0x3b   : > { %3022 = vmatmul.mubr.msk.f32.gmra.mrb[4].mxu0 %vm337_vm4, %v585_v17  ;;  %817 = vmatprep.mubr.f32.mxu1 %v4096_v7 }
  0x3c   : > { %696 = vmatprep.mubr.f32.mxu0 %v4096_v7 }
  0x3e   : > { %3045 = vmatmul.mubr.msk.f32.gmra.mrb[14].mxu1 %vm337_vm4, %v358_v63 }
  0x3f   : > { %3023 = vmatmul.mubr.msk.f32.gmra.mrb[6].mxu0 %vm337_vm4, %v586_v18  ;;  %894 = vmatprep.mubr.f32.mxu1 %v4096_v7 }
  0x40   : > { %1117 = vmatprep.mubr.f32.mxu0 %v4096_v7 }
  0x42   : > { %3048 = vmatmul.mubr.msk.f32.vlgmr.msra.gmra.mrb[8].mxu1 %vm337_vm4, %v4319_v50 }
  0x43   : > { %900 = vmatprep.mubr.f32.mxu1 %v4096_v7  ;;  %3466 = vmatpush1.bf16.msra.mxu1 %v3465_v23  ;;  %v3085_v23 = vld [vmem:[%s5774_s4 + $0x168] sm:$0xff] }
  0x44   : > { %3469 = vmatprep.subr.msk.bf16.mxu1 %vm4235_vm3, %v3467_v24  ;;  %v3087_v24 = vld [vmem:[%s5774_s4 + $0x178] sm:$0xff] }
  0x46   : > { %3049 = vmatmul.mubr.msk.f32.gmra.mrb[10].mxu1 %vm337_vm4, %v4335_v57 }
  0x47   : > { %906 = vmatprep.mubr.f32.mxu1 %v4096_v7  ;;  %3472 = vmatpush1.bf16.msk.msra.mxu1 %vm4235_vm3, %v3470_v27  ;;  %v3499_v27 = vpack.c.bf16 %v3082_v22, %v3080_v21 }
  0x4a   : > { %3050 = vmatmul.mubr.msk.f32.gmra.mrb[12].mxu1 %vm337_vm4, %v4346_v62 }
  0x4b   : > { %912 = vmatprep.mubr.f32.mxu1 %v4096_v7 }
  0x4e   : > { %3051 = vmatmul.mubr.msk.f32.gmra.mrb[14].mxu1 %vm337_vm4, %v346_v0 }
  0x4f   : > { %998 = vmatprep.mubr.f32.mxu1 %v4096_v7 }
  0x52   : > { %3062 = vmatmul.mubr.msk.f32.vlgmr.msra.gmra.mrb[8].mxu1 %vm337_vm4, %v583_v5  ;;  %v3077_v5 = vld [vmem:[%s5774_s4 + $0x128] sm:$0xff] }
  0x53   : > { %1004 = vmatprep.mubr.f32.mxu1 %v4096_v7  ;;  %v3493_v11 = vpack.c.bf16 %v3079_v6, %v3077_v5  ;;  %v1275_v5 = vld [vmem:[%s5774_s4 + $0x8] sm:$0xff]  ;;  %v1277_v6 = vld [vmem:[%s5774_s4 + $0x18] sm:$0xff] }
  0x56   : > { %3063 = vmatmul.mubr.msk.f32.gmra.mrb[10].mxu1 %vm337_vm4, %v584_v13  ;;  %v3078_v13 = vld [vmem:[%s5774_s4 + $0x130] sm:$0xff] }
  0x57   : > { %1010 = vmatprep.mubr.f32.mxu1 %v4096_v7  ;;  %v3495_v19 = vpack.c.bf16 %v3078_v13, %v3076_v12 }
  0x5a   : > { %3064 = vmatmul.mubr.msk.f32.gmra.mrb[12].mxu1 %vm337_vm4, %v585_v17  ;;  %v1039_v17 = vld [vmem:[%s5773_s3] sm:$0xff] }
  0x5b   : > { %1016 = vmatprep.mubr.f32.mxu1 %v4096_v7 }
  0x5e   : > { %3065 = vmatmul.mubr.msk.f32.gmra.mrb[14].mxu1 %vm337_vm4, %v586_v18  ;;  %v3070_v18 = vld [vmem:[%s5773_s3 + $0x10] sm:$0xff] }
  0x5f   : > { %1203 = vmatprep.mubr.f32.mxu1 %v4096_v7 }
  0xf5   : > { %v453_v28 = vpop.f32.mrb[0].mxu1 }
  0xf6   : > { %v455_v29 = vpop.f32.mrb[1].mxu1 }
  0xf9   : > { %v459_v30 = vpop.f32.mrb[2].mxu1 }
  0xfa   : > { %v461_v31 = vpop.f32.mrb[3].mxu1 }
  0xfd   : > { %v465_v32 = vpop.f32.mrb[4].mxu1 }
  0xfe   : > { %v467_v33 = vpop.f32.mrb[5].mxu1 }
 0x101   : > { %v471_v34 = vpop.f32.mrb[6].mxu1 }
 0x102   : > { %v473_v35 = vpop.f32.mrb[7].mxu1 }
 0x106   : > { %v680_v36 = vpop.f32.mrb[0].mxu0 }
 0x107   : > { %v3929_v37 = vadd.f32 %v680_v36, %v453_v28  ;;  %v682_v38 = vpop.f32.mrb[1].mxu0  ;;  %v3501_v28 = vpack.c.bf16 %v3087_v24, %v3085_v23  ;;  %v3090_v36 = vld [vmem:[%s5774_s4 + $0x190] sm:$0xff] }
 0x108   : > { %v3930_v39 = vadd.f32 %v682_v38, %v455_v29  ;;  %v3084_v29 = vld [vmem:[%s5774_s4 + $0x160] sm:$0xff]  ;;  %v1222_v38 = vlaneseq }
 0x10a   : > { %v686_v40 = vpop.f32.mrb[2].mxu0  ;;  %vm1242_vm6 = vcmp.lt.s32.totalorder %v1222_v38, 140 }
 0x10b   : > { %v3931_v41 = vadd.f32 %v686_v40, %v459_v30  ;;  %v688_v42 = vpop.f32.mrb[3].mxu0  ;;  %v3086_v30 = vld [vmem:[%s5774_s4 + $0x170] sm:$0xff]  ;;  %v3095_v40 = vld [vmem:[%s5774_s4 + $0x1b8] sm:$0xff]  ;;  %1244 = vst.msk [vmem:[#allocation3] ss:$8 sm:$0x3] %vm1242_vm6, %v4096_v7 }
 0x10c   : > { %v3932_v43 = vadd.f32 %v688_v42, %v461_v31  ;;  %v3503_v31 = vpack.c.bf16 %v3086_v30, %v3084_v29  ;;  %v3092_v42 = vld [vmem:[%s5774_s4 + $0x1a0] sm:$0xff]  ;;  %1247 = vst.msk [vmem:[#allocation3 + $0x17] ss:$8 sm:$0x3] %vm1242_vm6, %v4096_v7 }
 0x10e   : > { %v692_v44 = vpop.f32.mrb[4].mxu0 }
 0x10f   : > { %v3933_v45 = vadd.f32 %v692_v44, %v465_v32  ;;  %v694_v46 = vpop.f32.mrb[5].mxu0  ;;  %v3089_v32 = vld [vmem:[%s5774_s4 + $0x188] sm:$0xff] }
 0x110   : > { %v3934_v47 = vadd.f32 %v694_v46, %v467_v33  ;;  %v3091_v33 = vld [vmem:[%s5774_s4 + $0x198] sm:$0xff] }
 0x111   : > { %v3099_v46 = vld [vmem:[%s5774_s4 + $0x1d8] sm:$0xff] }
 0x112   : > { %v698_v48 = vpop.f32.mrb[6].mxu0 }
 0x113   : > { %v3935_v49 = vadd.f32 %v698_v48, %v471_v34  ;;  %v700_v50 = vpop.f32.mrb[7].mxu0  ;;  %v3505_v34 = vpack.c.bf16 %v3091_v33, %v3089_v32  ;;  %v3096_v48 = vld [vmem:[%s5774_s4 + $0x1c0] sm:$0xff] }
 0x114   : > { %v3936_v51 = vadd.f32 %v700_v50, %v473_v35  ;;  %v3088_v35 = vld [vmem:[%s5774_s4 + $0x180] sm:$0xff] }
 0x125   : > { %v1000_v52 = vpop.f32.mrb[8].mxu1 }
 0x126   : > { %v1031_v53 = vmax.f32 %v3929_v37, %v1000_v52  ;;  %v1002_v54 = vpop.f32.mrb[9].mxu1  ;;  %v3507_v37 = vpack.c.bf16 %v3090_v36, %v3088_v35  ;;  %v3103_v52 = vld [vmem:[%s5774_s4 + $0x1f8] sm:$0xff] }
 0x127   : > { %v1032_v55 = vmax.f32 %v3930_v39, %v1002_v54  ;;  %v3093_v39 = vld [vmem:[%s5774_s4 + $0x1a8] sm:$0xff]  ;;  %v3100_v54 = vld [vmem:[%s5774_s4 + $0x1e0] sm:$0xff] }
 0x129   : > { %v1006_v56 = vpop.f32.mrb[10].mxu1 }
 0x12a   : > { %v1033_v57 = vmax.f32 %v3931_v41, %v1006_v56  ;;  %v1008_v58 = vpop.f32.mrb[11].mxu1  ;;  %v3509_v41 = vpack.c.bf16 %v3095_v40, %v3093_v39 }
 0x12b   : > { %v1034_v59 = vmax.f32 %v3932_v43, %v1008_v58  ;;  %v3094_v43 = vld [vmem:[%s5774_s4 + $0x1b0] sm:$0xff]  ;;  %v3107_v58 = vld [vmem:[%s5774_s4 + $0x218] sm:$0xff] }
 0x12c   : > { %v3475_v60 = vpack.c.bf16 %v1033_v57, %v1031_v53  ;;  %v3511_v44 = vpack.c.bf16 %v3094_v43, %v3092_v42  ;;  %v3105_v57 = vld [vmem:[%s5774_s4 + $0x208] sm:$0xff]  ;;  %v1274_v43 = vld [vmem:[%s5774_s4] sm:$0xff] }
 0x12d   : > { %v3473_v61 = vpack.c.bf16 %v1034_v59, %v1032_v55  ;;  %v1012_v62 = vpop.f32.mrb[12].mxu1  ;;  %v3102_v55 = vld [vmem:[%s5774_s4 + $0x1f0] sm:$0xff]  ;;  %v3104_v59 = vld [vmem:[%s5774_s4 + $0x200] sm:$0xff] }
 0x12e   : > { %v1035_v63 = vmax.f32 %v3933_v45, %v1012_v62  ;;  %v1014_v0 = vpop.f32.mrb[13].mxu1  ;;  %v3097_v45 = vld [vmem:[%s5774_s4 + $0x1c8] sm:$0xff]  ;;  %v3519_v56 = vpack.c.bf16 %v3102_v55, %v3100_v54 }
 0x12f   : > { %v1036_v1 = vmax.f32 %v3934_v47, %v1014_v0  ;;  %3474 = vmatprep.subr.bf16.mxu0 %v3473_v61  ;;  %3484 = vmatprep.subr.bf16.mxu1 %v3473_v61  ;;  %v3513_v47 = vpack.c.bf16 %v3099_v46, %v3097_v45  ;;  %v3106_v61 = vld [vmem:[%s5774_s4 + $0x210] sm:$0xff]  ;;  %v3109_v62 = vld [vmem:[%s5774_s4 + $0x228] sm:$0xff] }
 0x130   : > { %3476 = vmatpush1.bf16.msra.mxu0 %v3475_v60  ;;  %3486 = vmatpush1.bf16.msra.mxu1 %v3475_v60  ;;  %v3521_v60 = vpack.c.bf16 %v3107_v58, %v3105_v57  ;;  %v3523_v0 = vpack.c.bf16 %v3106_v61, %v3104_v59  ;;  %v1276_v46 = vld [vmem:[%s5774_s4 + $0x10] sm:$0xff]  ;;  %v1278_v57 = vld [vmem:[%s5774_s4 + $0x20] sm:$0xff]  ;;  %v1285_v61 = vld [vmem:[%s5774_s4 + $0x58] sm:$0xff] }
 0x131   : > { %v1018_v2 = vpop.f32.mrb[14].mxu1  ;;  %v3533_v54 = vpack.c.bf16 %v1276_v46, %v1274_v43  ;;  %v1280_v58 = vld [vmem:[%s5774_s4 + $0x30] sm:$0xff] }
 0x132   : > { %v1037_v3 = vmax.f32 %v3935_v49, %v1018_v2  ;;  %v1020_v4 = vpop.f32.mrb[15].mxu1  ;;  %v3098_v49 = vld [vmem:[%s5774_s4 + $0x1d0] sm:$0xff]  ;;  %v3108_v2 = vld [vmem:[%s5774_s4 + $0x220] sm:$0xff] }
 0x133   : > { %v1038_v8 = vmax.f32 %v3936_v51, %v1020_v4  ;;  %v3515_v50 = vpack.c.bf16 %v3098_v49, %v3096_v48  ;;  %v3101_v51 = vld [vmem:[%s5774_s4 + $0x1e8] sm:$0xff]  ;;  %v1308_v43 = vld [vmem:[%s5774_s4 + $0x110] sm:$0xf] }
 0x134   : > { %v3480_v9 = vpack.c.bf16 %v1037_v3, %v1035_v63  ;;  %v3517_v53 = vpack.c.bf16 %v3103_v52, %v3101_v51  ;;  %v3111_v63 = vld [vmem:[%s5774_s4 + $0x238] sm:$0xf]  ;;  %v3110_v3 = vld [vmem:[%s5774_s4 + $0x230] sm:$0xf]  ;;  %v1279_v49 = vld [vmem:[%s5774_s4 + $0x28] sm:$0xff] }
 0x135   : > { %v3477_v10 = vpack.c.bf16 %v1038_v8, %v1036_v1  ;;  %v3525_v1 = vpack.c.bf16 %v3111_v63, %v3109_v62  ;;  %v3528_v4 = vpack.c.bf16 %v3110_v3, %v3108_v2  ;;  %v3531_v8 = vpack.c.bf16 %v1277_v6, %v1275_v5  ;;  %v1287_v2 = vld [vmem:[%s5774_s4 + $0x68] sm:$0xff]  ;;  %v1289_v3 = vld [vmem:[%s5774_s4 + $0x78] sm:$0xff] }
 0x136   : > { %v3537_v62 = vpack.c.bf16 %v1280_v58, %v1278_v57  ;;  %v3543_v6 = vpack.c.bf16 %v1289_v3, %v1287_v2  ;;  %v3124_v58 = vld [vmem:[%s5774_s4 + $0x260] sm:$0xff] }
 0x137   : > { %3479 = vmatprep.subr.msk.bf16.mxu0 %vm4235_vm3, %v3477_v10  ;;  %3489 = vmatprep.subr.msk.bf16.mxu1 %vm4235_vm3, %v3477_v10 }
 0x138   : > { %3482 = vmatpush1.bf16.msk.msra.mxu0 %vm4235_vm3, %v3480_v9  ;;  %3492 = vmatpush1.bf16.msk.msra.mxu1 %vm4235_vm3, %v3480_v9  ;;  %v4593_v9 = vshrl.u32 %v1222_v38, 7 }
 0x139   : > { %3494 = vmatprep.subr.bf16.mxu1 %v3493_v11  ;;  %v1220_v11 = vld [vmem:[%s5772_s2] sm:$0x3] }
 0x13a   : > { %v1224_v10 = vsub.s32 0, %v4593_v9  ;;  %v1228_v12 = vsub.s32 1, %v4593_v9  ;;  %v3291_v9 = vld [vmem:[%s5777_s7 + $0xa0] sm:$0xff] }
 0x13b   : > { %3068 = vmatmul.mubr.msk.f32.vlgmr.msra.gmra.mrb[8].mxu0 %vm337_vm4, %v1039_v17  ;;  %3074 = vmatmul.mubr.msk.f32.vlgmr.msra.gmra.mrb[16].mxu1 %vm337_vm4, %v3070_v18 }
 0x13c   : > { %1123 = vmatprep.mubr.f32.mxu0 %v4096_v7  ;;  %1209 = vmatprep.mubr.f32.mxu1 %v4096_v7  ;;  %v1225_v13 = vrot.slane %v1220_v11, %v1224_v10  ;;  %v1229_v17 = vrot.slane %v1220_v11, %v1228_v12  ;;  %v1288_v11 = vld [vmem:[%s5774_s4 + $0x70] sm:$0xff] }
 0x13d   : > { %3496 = vmatpush1.bf16.msra.mxu1 %v3495_v19 }
 0x13e   : > { %3498 = vmatprep.subr.bf16.mxu1 %v3497_v20 }
 0x13f   : > { %3069 = vmatmul.mubr.msk.f32.gmra.mrb[10].mxu0 %vm337_vm4, %v1040_v25  ;;  %3075 = vmatmul.mubr.msk.f32.gmra.mrb[18].mxu1 %vm337_vm4, %v3071_v26 }
 0x140   : > { %2129 = vmatprep.mubr.f32.mxu0 %v4096_v7 }
 0x141   : > { %3500 = vmatpush1.bf16.msra.mxu1 %v3499_v27 }
 0x142   : > { %3502 = vmatprep.subr.bf16.mxu1 %v3501_v28 }
 0x145   : > { %3504 = vmatpush1.bf16.msra.mxu1 %v3503_v31 }
 0x146   : > { %3506 = vmatprep.subr.bf16.mxu1 %v3505_v34 }
 0x149   : > { %3508 = vmatpush1.bf16.msra.mxu1 %v3507_v37 }
 0x14a   : > { %3510 = vmatprep.subr.bf16.mxu1 %v3509_v41 }
 0x14d   : > { %3512 = vmatpush1.bf16.msra.mxu1 %v3511_v44 }
 0x14e   : > { %3514 = vmatprep.subr.bf16.mxu1 %v3513_v47 }
 0x151   : > { %3516 = vmatpush1.bf16.msra.mxu1 %v3515_v50  ;;  %v1281_v50 = vld [vmem:[%s5774_s4 + $0x38] sm:$0xff] }
 0x152   : > { %3518 = vmatprep.subr.bf16.mxu1 %v3517_v53 }
 0x155   : > { %3520 = vmatpush1.bf16.msra.mxu1 %v3519_v56  ;;  %v3535_v56 = vpack.c.bf16 %v1281_v50, %v1279_v49  ;;  %v3120_v49 = vld [vmem:[%s5774_s4 + $0x240] sm:$0xff]  ;;  %v3122_v50 = vld [vmem:[%s5774_s4 + $0x250] sm:$0xff] }
 0x156   : > { %3522 = vmatprep.subr.bf16.mxu1 %v3521_v60  ;;  %v1283_v60 = vld [vmem:[%s5774_s4 + $0x48] sm:$0xff] }
 0x157   : > { %v3539_v63 = vpack.c.bf16 %v1285_v61, %v1283_v60  ;;  %v3126_v60 = vld [vmem:[%s5774_s4 + $0x270] sm:$0xff]  ;;  %v3129_v61 = vld [vmem:[%s5774_s4 + $0x288] sm:$0xff] }
 0x158   : > { %v3575_v3 = vpack.c.bf16 %v3126_v60, %v3124_v58 }
 0x159   : > { %3524 = vmatpush1.bf16.msra.mxu1 %v3523_v0  ;;  %v1282_v0 = vld [vmem:[%s5774_s4 + $0x40] sm:$0xff] }
 0x15a   : > { %3527 = vmatprep.subr.msk.bf16.mxu1 %vm4235_vm3, %v3525_v1  ;;  %v1284_v1 = vld [vmem:[%s5774_s4 + $0x50] sm:$0xff] }
 0x15b   : > { %v3541_v5 = vpack.c.bf16 %v1284_v1, %v1282_v0  ;;  %v3131_v0 = vld [vmem:[%s5774_s4 + $0x298] sm:$0xff] }
 0x15d   : > { %3530 = vmatpush1.bf16.msk.msra.mxu1 %vm4235_vm3, %v3528_v4 }
 0x15e   : > { %3532 = vmatprep.subr.bf16.mxu1 %v3531_v8  ;;  %v1286_v8 = vld [vmem:[%s5774_s4 + $0x60] sm:$0xff] }
 0x20e   : > { %v1119_v14 = vpop.f32.mrb[8].mxu0  ;;  %v1205_v16 = vpop.f32.mrb[16].mxu1 }
 0x20f   : > { %v1216_v18 = vmax.f32 %v1119_v14, %v1205_v16  ;;  %v1121_v19 = vpop.f32.mrb[9].mxu0  ;;  %v1207_v20 = vpop.f32.mrb[17].mxu1  ;;  %v1293_v14 = vld [vmem:[%s5774_s4 + $0x98] sm:$0xff]  ;;  %v3545_v16 = vpack.c.bf16 %v1288_v11, %v1286_v8  ;;  %v3128_v8 = vld [vmem:[%s5774_s4 + $0x280] sm:$0xff]  ;;  %v3130_v11 = vld [vmem:[%s5774_s4 + $0x290] sm:$0xff] }
 0x210   : > { %v1217_v21 = vmax.f32 %v1121_v19, %v1207_v20  ;;  %v1292_v19 = vld [vmem:[%s5774_s4 + $0x90] sm:$0xff]  ;;  %v1295_v20 = vld [vmem:[%s5774_s4 + $0xa8] sm:$0xff] }
 0x211   : > { %v1232_v22 = vadd.f32 %v1225_v13, %v1216_v18  ;;  %v1290_v18 = vld [vmem:[%s5774_s4 + $0x80] sm:$0xff] }
 0x212   : > { %v1233_v23 = vadd.f32 %v1229_v17, %v1217_v21  ;;  %v1125_v24 = vpop.f32.mrb[10].mxu0  ;;  %v1211_v25 = vpop.f32.mrb[18].mxu1  ;;  %v1297_v21 = vld [vmem:[%s5774_s4 + $0xb8] sm:$0xff] }
 0x213   : > { %v1236_v26 = vmax.f32 %v1232_v22, 0.0  ;;  %v1218_v27 = vmax.f32 %v1125_v24, %v1211_v25  ;;  %v1127_v28 = vpop.f32.mrb[11].mxu0  ;;  %v1213_v29 = vpop.f32.mrb[19].mxu1  ;;  %v3549_v22 = vpack.c.bf16 %v1292_v19, %v1290_v18  ;;  %v1294_v24 = vld [vmem:[%s5774_s4 + $0xa0] sm:$0xff]  ;;  %v1296_v25 = vld [vmem:[%s5774_s4 + $0xb0] sm:$0xff]  ;;  %v3579_v18 = vpack.c.bf16 %v3130_v11, %v3128_v8 }
 0x214   : > { %v1237_v30 = vmax.f32 %v1233_v23, 0.0  ;;  %v1219_v31 = vmax.f32 %v1127_v28, %v1213_v29  ;;  %v3551_v23 = vpack.c.bf16 %v1297_v21, %v1295_v20  ;;  %v3553_v28 = vpack.c.bf16 %v1296_v25, %v1294_v24  ;;  %v3132_v20 = vld [vmem:[%s5774_s4 + $0x2a0] sm:$0xff]  ;;  %v3134_v21 = vld [vmem:[%s5774_s4 + $0x2b0] sm:$0xff] }
 0x215   : > { %v1254_v32 = vrot.slane %v1236_v26, 7  ;;  %v1234_v33 = vadd.f32 %v1225_v13, %v1218_v27  ;;  %v1291_v13 = vld [vmem:[%s5774_s4 + $0x88] sm:$0xff]  ;;  %v1301_v27 = vld [vmem:[%s5774_s4 + $0xd8] sm:$0xff]  ;;  %v3583_v24 = vpack.c.bf16 %v3134_v21, %v3132_v20 }
 0x216   : > { %v1255_v34 = vrot.slane %v1237_v30, 7  ;;  %v1235_v35 = vadd.f32 %v1229_v17, %v1219_v31  ;;  %v3547_v17 = vpack.c.bf16 %v1293_v14, %v1291_v13  ;;  %v1299_v26 = vld [vmem:[%s5774_s4 + $0xc8] sm:$0xff]  ;;  %v1298_v30 = vld [vmem:[%s5774_s4 + $0xc0] sm:$0xff]  ;;  %v1300_v31 = vld [vmem:[%s5774_s4 + $0xd0] sm:$0xff] }
 0x217   : > { %1264 = vst [vmem:[#allocation3] sm:$0xfe] %v1254_v32  ;;  %v1238_v36 = vmax.f32 %v1234_v33, 0.0  ;;  %v3555_v29 = vpack.c.bf16 %v1301_v27, %v1299_v26  ;;  %v1305_v33 = vld [vmem:[%s5774_s4 + $0xf8] sm:$0xff]  ;;  %v3133_v14 = vld [vmem:[%s5774_s4 + $0x2a8] sm:$0xff]  ;;  %v3136_v26 = vld [vmem:[%s5774_s4 + $0x2c0] sm:$0xff] }
 0x218   : > { %1266 = vst.msk [vmem:[#allocation3 + $0x8] sm:$0xfe] %vm1265_vm7, %v1255_v34  ;;  %v1239_v37 = vmax.f32 %v1235_v35, 0.0  ;;  %v3138_v27 = vld [vmem:[%s5774_s4 + $0x2d0] sm:$0xff]  ;;  %v3205_v20 = vld [vmem:[%s5774_s4 + $0x4c8] sm:$0xff]  ;;  %v3207_v21 = vld [vmem:[%s5774_s4 + $0x4d8] sm:$0xff] }
 0x219   : > { %v1256_v38 = vrot.slane %v1238_v36, 7  ;;  %v1302_v36 = vld [vmem:[%s5774_s4 + $0xe0] sm:$0xff] }
 0x21a   : > { %v1258_v39 = vrot.slane %v1239_v37, 7  ;;  %v1304_v37 = vld [vmem:[%s5774_s4 + $0xf0] sm:$0xff] }
 0x21b   : > { %v1257_v40 = vsel %vm1253_vm8, %v1254_v32, %v1256_v38  ;;  %v1303_v32 = vld [vmem:[%s5774_s4 + $0xe8] sm:$0xff] }
 0x21c   : > { %1267 = vst [vmem:[#allocation3 + $0x10] sm:$0x7f] %v1257_v40  ;;  %v1259_v41 = vsel %vm1253_vm8, %v1255_v34, %v1258_v39  ;;  %v3557_v34 = vpack.c.bf16 %v1300_v31, %v1298_v30  ;;  %v3559_v35 = vpack.c.bf16 %v1305_v33, %v1303_v32  ;;  %v1307_v38 = vld [vmem:[%s5774_s4 + $0x108] sm:$0xff]  ;;  %v1309_v39 = vld [vmem:[%s5774_s4 + $0x118] sm:$0xf]  ;;  %v3561_v40 = vpack.c.bf16 %v1304_v37, %v1302_v36  ;;  %v3140_v32 = vld [vmem:[%s5774_s4 + $0x2e0] sm:$0xff] }
 0x21d   : > { %1269 = vst.msk [vmem:[#allocation3 + $0x18] sm:$0x7f] %vm1268_vm9, %v1259_v41  ;;  %v3563_v41 = vpack.c.bf16 %v1309_v39, %v1307_v38  ;;  %v3587_v30 = vpack.c.bf16 %v3138_v27, %v3136_v26  ;;  %v3142_v33 = vld [vmem:[%s5774_s4 + $0x2f0] sm:$0xff]  ;;  %v3144_v38 = vld [vmem:[%s5774_s4 + $0x300] sm:$0xff]  ;;  %v3209_v26 = vld [vmem:[%s5774_s4 + $0x4e8] sm:$0xff] }
 0x21e   : > { %v1310_v44 = vld [vmem:[#allocation3] sm:$0xfe]  ;;  %v3591_v36 = vpack.c.bf16 %v3142_v33, %v3140_v32  ;;  %v3146_v39 = vld [vmem:[%s5774_s4 + $0x310] sm:$0xff]  ;;  %v3211_v27 = vld [vmem:[%s5774_s4 + $0x4f8] sm:$0xff] }
 0x21f   : > { %v1311_v42 = vld [vmem:[#allocation3 + $0x8] sm:$0xfe]  ;;  %v1356_v53 = vrot.slane %v1310_v44, 1  ;;  %v1541_v60 = vld [vmem:[#allocation3] sm:$0xfc]  ;;  %v3215_v33 = vld [vmem:[%s5774_s4 + $0x518] sm:$0xff] }
 0x220   : > { %v1359_v51 = vrot.slane %v1311_v42, 1  ;;  %v4656_v4 = vld [vmem:[#allocation3 + $0x8] sm:$0xff]  ;;  %v1306_v42 = vld [vmem:[%s5774_s4 + $0x100] sm:$0xff]  ;;  %v1587_v8 = vrot.slane %v1541_v60, 2  ;;  %v3231_v60 = vld [vmem:[%s5774_s4 + $0x598] sm:$0xf] }
 0x221   : > { %v3121_v44 = vld [vmem:[%s5774_s4 + $0x248] sm:$0xff]  ;;  %v3566_v46 = vpack.c.bf16 %v1308_v43, %v1306_v42  ;;  %v3595_v42 = vpack.c.bf16 %v3146_v39, %v3144_v38  ;;  %v3219_v38 = vld [vmem:[%s5774_s4 + $0x538] sm:$0xff] }
 0x222   : > { %v3213_v32 = vld [vmem:[%s5774_s4 + $0x508] sm:$0xff] }
 0x223   : > { %v1312_v45 = vld [vmem:[#allocation3 + $0x10] sm:$0x7f] }
 0x224   : > { %v1313_v47 = vld [vmem:[#allocation3 + $0x18] sm:$0x7f]  ;;  %v4610_v48 = vrot.slane %v1312_v45, 1  ;;  %v4775_v13 = vld [vmem:[#allocation3 + $0x10] sm:$0x3f] }
 0x225   : > { %v4618_v52 = vrot.slane %v1313_v47, 1  ;;  %v3123_v45 = vld [vmem:[%s5774_s4 + $0x258] sm:$0xff] }
 0x226   : > { %v4632_v59 = vsel %vm1355_vm10, %v1356_v53, %v4610_v48  ;;  %v3569_v47 = vpack.c.bf16 %v3123_v45, %v3121_v44  ;;  %v3127_v53 = vld [vmem:[%s5774_s4 + $0x278] sm:$0xff]  ;;  %v3148_v44 = vld [vmem:[%s5774_s4 + $0x320] sm:$0xff]  ;;  %v3150_v45 = vld [vmem:[%s5774_s4 + $0x330] sm:$0xff] }
 0x227   : > { %v4621_v55 = vsel %vm1355_vm10, %v1359_v51, %v4618_v52  ;;  %v3125_v51 = vld [vmem:[%s5774_s4 + $0x268] sm:$0xff]  ;;  %v4763_v1 = vld [vmem:[#allocation3 + $0x18] sm:$0x3f] }
 0x228   : > { %3114 = vmatprep.mubr.msk.f32.mxu1 %vm1364_vm11, %v4621_v55  ;;  %v3573_v57 = vpack.c.bf16 %v3127_v53, %v3125_v51  ;;  %v3152_v51 = vld [vmem:[%s5774_s4 + $0x340] sm:$0xff]  ;;  %v3154_v53 = vld [vmem:[%s5774_s4 + $0x350] sm:$0xf] }
 0x229   : > { %1440 = vmatmul.mubr.f32.vlgmr.msra.gmra.mrb[20].mxu1 %v4632_v59  ;;  %v3604_v58 = vpack.c.bf16 %v3154_v53, %v3152_v51  ;;  %v3227_v51 = vld [vmem:[%s5774_s4 + $0x578] sm:$0xff] }
 0x22a   : > { %3534 = vmatpush1.bf16.msra.mxu1 %v3533_v54  ;;  %3115 = vmatprep.mubr.msk.f32.mxu1 %vm1364_vm11, %v4618_v52  ;;  %v3571_v54 = vpack.c.bf16 %v3122_v50, %v3120_v49  ;;  %v3599_v49 = vpack.c.bf16 %v3150_v45, %v3148_v44  ;;  %v3223_v44 = vld [vmem:[%s5774_s4 + $0x558] sm:$0xff] }
 0x22b   : > { %3536 = vmatprep.subr.bf16.mxu1 %v3535_v56  ;;  %v1544_v56 = vld [vmem:[#allocation3 + $0x18] sm:$0xff] }
 0x22c   : > { %v4765_v2 = vrot.slane %v1544_v56, 2  ;;  %v3199_v56 = vld [vmem:[%s5774_s4 + $0x498] sm:$0xff] }
 0x22d   : > { %1446 = vmatmul.mubr.f32.gmra.mrb[22].mxu1 %v4610_v48 }
 0x22e   : > { %3538 = vmatpush1.bf16.msra.mxu1 %v3537_v62  ;;  %3118 = vmatprep.mubr.msk.f32.mxu1 %vm1364_vm11, %v4656_v4  ;;  %v4757_v62 = vld [vmem:[#allocation3] sm:$0xff] }
 0x22f   : > { %3540 = vmatprep.subr.bf16.mxu1 %v3539_v63  ;;  %v1542_v63 = vld [vmem:[#allocation3 + $0x8] sm:$0xfc] }
 0x232   : > { %3542 = vmatpush1.bf16.msra.mxu1 %v3541_v5  ;;  %v1590_v5 = vrot.slane %v1542_v63, 2  ;;  %v3196_v63 = vld [vmem:[%s5774_s4 + $0x480] sm:$0xff] }
 0x233   : > { %3544 = vmatprep.subr.bf16.mxu1 %v3543_v6  ;;  %v3577_v6 = vpack.c.bf16 %v3131_v0, %v3129_v61  ;;  %v3198_v0 = vld [vmem:[%s5774_s4 + $0x490] sm:$0xff] }
 0x234   : > { %v3609_v11 = vpack.c.bf16 %v3198_v0, %v3196_v63  ;;  %v3228_v0 = vld [vmem:[%s5774_s4 + $0x580] sm:$0xff] }
 0x236   : > { %3546 = vmatpush1.bf16.msra.mxu1 %v3545_v16  ;;  %v3135_v16 = vld [vmem:[%s5774_s4 + $0x2b8] sm:$0xff] }
 0x237   : > { %3548 = vmatprep.subr.bf16.mxu1 %v3547_v17  ;;  %v4786_v17 = vsel %vm1586_vm12, %v1590_v5, %v4765_v2  ;;  %v3581_v19 = vpack.c.bf16 %v3135_v16, %v3133_v14  ;;  %v3201_v5 = vld [vmem:[%s5774_s4 + $0x4a8] sm:$0xff]  ;;  %v3200_v16 = vld [vmem:[%s5774_s4 + $0x4a0] sm:$0xff] }
 0x23a   : > { %3550 = vmatpush1.bf16.msra.mxu1 %v3549_v22  ;;  %v3137_v22 = vld [vmem:[%s5774_s4 + $0x2c8] sm:$0xff] }
 0x23b   : > { %3552 = vmatprep.subr.bf16.mxu1 %v3551_v23  ;;  %v3139_v23 = vld [vmem:[%s5774_s4 + $0x2d8] sm:$0xff] }
 0x23c   : > { %v3585_v25 = vpack.c.bf16 %v3139_v23, %v3137_v22  ;;  %v3615_v23 = vpack.c.bf16 %v3207_v21, %v3205_v20  ;;  %v3165_v20 = vld [vmem:[%s5774_s4 + $0x388] sm:$0xff]  ;;  %v3167_v21 = vld [vmem:[%s5774_s4 + $0x398] sm:$0xff] }
 0x23e   : > { %3554 = vmatpush1.bf16.msra.mxu1 %v3553_v28  ;;  %v3141_v28 = vld [vmem:[%s5774_s4 + $0x2e8] sm:$0xff] }
 0x23f   : > { %3556 = vmatprep.subr.bf16.mxu1 %v3555_v29  ;;  %v3143_v29 = vld [vmem:[%s5774_s4 + $0x2f8] sm:$0xff] }
 0x240   : > { %v3589_v31 = vpack.c.bf16 %v3143_v29, %v3141_v28  ;;  %v3619_v29 = vpack.c.bf16 %v3211_v27, %v3209_v26  ;;  %v3169_v26 = vld [vmem:[%s5774_s4 + $0x3a8] sm:$0xff]  ;;  %v3171_v27 = vld [vmem:[%s5774_s4 + $0x3b8] sm:$0xff] }
 0x242   : > { %3558 = vmatpush1.bf16.msra.mxu1 %v3557_v34  ;;  %v3145_v34 = vld [vmem:[%s5774_s4 + $0x308] sm:$0xff] }
 0x243   : > { %3560 = vmatprep.subr.bf16.mxu1 %v3559_v35  ;;  %v3147_v35 = vld [vmem:[%s5774_s4 + $0x318] sm:$0xff] }
 0x244   : > { %v3593_v37 = vpack.c.bf16 %v3147_v35, %v3145_v34  ;;  %v3623_v34 = vpack.c.bf16 %v3215_v33, %v3213_v32  ;;  %v3212_v35 = vld [vmem:[%s5774_s4 + $0x500] sm:$0xff]  ;;  %v3173_v32 = vld [vmem:[%s5774_s4 + $0x3c8] sm:$0xff] }
 0x246   : > { %3562 = vmatpush1.bf16.msra.mxu1 %v3561_v40  ;;  %v3149_v40 = vld [vmem:[%s5774_s4 + $0x328] sm:$0xff] }
 0x247   : > { %3565 = vmatprep.subr.msk.bf16.mxu1 %vm4235_vm3, %v3563_v41  ;;  %v3151_v41 = vld [vmem:[%s5774_s4 + $0x338] sm:$0xff] }
 0x248   : > { %v3597_v43 = vpack.c.bf16 %v3151_v41, %v3149_v40  ;;  %v3216_v41 = vld [vmem:[%s5774_s4 + $0x520] sm:$0xff] }
 0x24a   : > { %3568 = vmatpush1.bf16.msk.msra.mxu1 %vm4235_vm3, %v3566_v46  ;;  %v3153_v46 = vld [vmem:[%s5774_s4 + $0x348] sm:$0xff] }
 0x24b   : > { %3570 = vmatprep.subr.bf16.mxu1 %v3569_v47  ;;  %v3155_v47 = vld [vmem:[%s5774_s4 + $0x358] sm:$0xf] }
 0x24c   : > { %v3601_v50 = vpack.c.bf16 %v3155_v47, %v3153_v46  ;;  %v3220_v47 = vld [vmem:[%s5774_s4 + $0x540] sm:$0xff] }
 0x24d   : > { %1529 = vmatmul.mubr.f32.vlgmr.msra.gmra.mrb[20].mxu1 %v4757_v62 }
 0x24e   : > { %3119 = vmatprep.mubr.msk.f32.mxu1 %vm1364_vm11, %v4763_v1  ;;  %3572 = vmatpush1.bf16.msra.mxu1 %v3571_v54  ;;  %v3197_v54 = vld [vmem:[%s5774_s4 + $0x488] sm:$0xff] }
 0x24f   : > { %3574 = vmatprep.subr.bf16.mxu1 %v3573_v57  ;;  %v1543_v57 = vld [vmem:[#allocation3 + $0x10] sm:$0xff]  ;;  %v3607_v61 = vpack.c.bf16 %v3199_v56, %v3197_v54  ;;  %v3224_v56 = vld [vmem:[%s5774_s4 + $0x560] sm:$0xff] }
 0x251   : > { %1535 = vmatmul.mubr.f32.gmra.mrb[22].mxu1 %v4775_v13 }
 0x252   : > { %3576 = vmatpush1.bf16.msra.mxu1 %v3575_v3  ;;  %3158 = vmatprep.mubr.msk.f32.mxu1 %vm1364_vm11, %v4786_v17  ;;  %v4870_v3 = vrot.slane %v1543_v57, 2  ;;  %v3226_v57 = vld [vmem:[%s5774_s4 + $0x570] sm:$0xff] }
 0x253   : > { %3578 = vmatprep.subr.bf16.mxu1 %v3577_v6  ;;  %v3203_v6 = vld [vmem:[%s5774_s4 + $0x4b8] sm:$0xff] }
 0x254   : > { %v3611_v14 = vpack.c.bf16 %v3203_v6, %v3201_v5  ;;  %v3230_v5 = vld [vmem:[%s5774_s4 + $0x590] sm:$0xf]  ;;  %v3161_v6 = vld [vmem:[%s5774_s4 + $0x368] sm:$0xff] }
 0x256   : > { %3580 = vmatpush1.bf16.msra.mxu1 %v3579_v18  ;;  %v3202_v18 = vld [vmem:[%s5774_s4 + $0x4b0] sm:$0xff] }
 0x257   : > { %3582 = vmatprep.subr.bf16.mxu1 %v3581_v19  ;;  %v4888_v19 = vsel %vm1586_vm12, %v1587_v8, %v4870_v3  ;;  %v3613_v22 = vpack.c.bf16 %v3202_v18, %v3200_v16  ;;  %v3163_v8 = vld [vmem:[%s5774_s4 + $0x378] sm:$0xff]  ;;  %v3160_v16 = vld [vmem:[%s5774_s4 + $0x360] sm:$0xff]  ;;  %v3162_v18 = vld [vmem:[%s5774_s4 + $0x370] sm:$0xff] }
 0x25a   : > { %3584 = vmatpush1.bf16.msra.mxu1 %v3583_v24  ;;  %v3204_v24 = vld [vmem:[%s5774_s4 + $0x4c0] sm:$0xff] }
 0x25b   : > { %3586 = vmatprep.subr.bf16.mxu1 %v3585_v25  ;;  %v3206_v25 = vld [vmem:[%s5774_s4 + $0x4d0] sm:$0xff] }
 0x25c   : > { %v3617_v28 = vpack.c.bf16 %v3206_v25, %v3204_v24  ;;  %v3164_v24 = vld [vmem:[%s5774_s4 + $0x380] sm:$0xff]  ;;  %v3166_v25 = vld [vmem:[%s5774_s4 + $0x390] sm:$0xff] }
 0x25e   : > { %3588 = vmatpush1.bf16.msra.mxu1 %v3587_v30  ;;  %v3208_v30 = vld [vmem:[%s5774_s4 + $0x4e0] sm:$0xff] }
 0x25f   : > { %3590 = vmatprep.subr.bf16.mxu1 %v3589_v31  ;;  %v3210_v31 = vld [vmem:[%s5774_s4 + $0x4f0] sm:$0xff] }
 0x262   : > { %3592 = vmatpush1.bf16.msra.mxu1 %v3591_v36  ;;  %v3214_v36 = vld [vmem:[%s5774_s4 + $0x510] sm:$0xff] }
 0x263   : > { %3594 = vmatprep.subr.bf16.mxu1 %v3593_v37  ;;  %v3217_v37 = vld [vmem:[%s5774_s4 + $0x528] sm:$0xff]  ;;  %v3625_v39 = vpack.c.bf16 %v3214_v36, %v3212_v35 }
 0x264   : > { %v3627_v40 = vpack.c.bf16 %v3219_v38, %v3217_v37  ;;  %v3177_v35 = vld [vmem:[%s5774_s4 + $0x3e8] sm:$0xff]  ;;  %v3176_v37 = vld [vmem:[%s5774_s4 + $0x3e0] sm:$0xff]  ;;  %v3178_v38 = vld [vmem:[%s5774_s4 + $0x3f0] sm:$0xff] }
 0x266   : > { %3596 = vmatpush1.bf16.msra.mxu1 %v3595_v42  ;;  %v3218_v42 = vld [vmem:[%s5774_s4 + $0x530] sm:$0xff] }
 0x267   : > { %3598 = vmatprep.subr.bf16.mxu1 %v3597_v43  ;;  %v3221_v43 = vld [vmem:[%s5774_s4 + $0x548] sm:$0xff]  ;;  %v3629_v45 = vpack.c.bf16 %v3218_v42, %v3216_v41  ;;  %v3663_v41 = vpack.c.bf16 %v3178_v38, %v3176_v37  ;;  %v3263_v38 = vld [vmem:[%s5774_s4 + $0x658] sm:$0xff] }
 0x268   : > { %v3631_v46 = vpack.c.bf16 %v3223_v44, %v3221_v43  ;;  %v3180_v43 = vld [vmem:[%s5774_s4 + $0x400] sm:$0xff]  ;;  %v3182_v44 = vld [vmem:[%s5774_s4 + $0x410] sm:$0xff]  ;;  %v3261_v37 = vld [vmem:[%s5774_s4 + $0x648] sm:$0xff] }
 0x26a   : > { %3600 = vmatpush1.bf16.msra.mxu1 %v3599_v49  ;;  %v3222_v49 = vld [vmem:[%s5774_s4 + $0x550] sm:$0xff] }
 0x26b   : > { %3603 = vmatprep.subr.msk.bf16.mxu1 %vm4235_vm3, %v3601_v50  ;;  %v3225_v50 = vld [vmem:[%s5774_s4 + $0x568] sm:$0xff]  ;;  %v3633_v53 = vpack.c.bf16 %v3222_v49, %v3220_v47  ;;  %v3667_v47 = vpack.c.bf16 %v3182_v44, %v3180_v43  ;;  %v3267_v44 = vld [vmem:[%s5774_s4 + $0x678] sm:$0xff] }
 0x26c   : > { %v3635_v54 = vpack.c.bf16 %v3227_v51, %v3225_v50  ;;  %v3184_v50 = vld [vmem:[%s5774_s4 + $0x420] sm:$0xff]  ;;  %v3186_v51 = vld [vmem:[%s5774_s4 + $0x430] sm:$0xff]  ;;  %v3265_v43 = vld [vmem:[%s5774_s4 + $0x668] sm:$0xff] }
 0x26e   : > { %3606 = vmatpush1.bf16.msk.msra.mxu1 %vm4235_vm3, %v3604_v58  ;;  %v3229_v58 = vld [vmem:[%s5774_s4 + $0x588] sm:$0xff] }
 0x26f   : > { %3608 = vmatprep.subr.bf16.mxu1 %v3607_v61  ;;  %v3637_v61 = vpack.c.bf16 %v3226_v57, %v3224_v56  ;;  %v3639_v63 = vpack.c.bf16 %v3231_v60, %v3229_v58  ;;  %v3671_v56 = vpack.c.bf16 %v3186_v51, %v3184_v50  ;;  %v3188_v58 = vld [vmem:[%s5774_s4 + $0x440] sm:$0xff]  ;;  %v3190_v60 = vld [vmem:[%s5774_s4 + $0x450] sm:$0xff]  ;;  %v3269_v50 = vld [vmem:[%s5774_s4 + $0x688] sm:$0xff] }
 0x270   : > { %v3271_v51 = vld [vmem:[%s5774_s4 + $0x698] sm:$0xff] }
 0x271   : > { %1670 = vmatmul.mubr.f32.vlgmr.msra.gmra.mrb[20].mxu1 %v4888_v19 }
 0x272   : > { %3159 = vmatprep.mubr.msk.f32.mxu1 %vm1364_vm11, %v4765_v2  ;;  %3610 = vmatpush1.bf16.msra.mxu1 %v3609_v11  ;;  %v3642_v11 = vpack.c.bf16 %v3230_v5, %v3228_v0  ;;  %v3675_v0 = vpack.c.bf16 %v3190_v60, %v3188_v58  ;;  %v3273_v58 = vld [vmem:[%s5774_s4 + $0x6a8] sm:$0xff]  ;;  %v3275_v60 = vld [vmem:[%s5774_s4 + $0x6b8] sm:$0xf] }
 0x273   : > { %3612 = vmatprep.subr.bf16.mxu1 %v3611_v14  ;;  %v3645_v14 = vpack.c.bf16 %v3163_v8, %v3161_v6  ;;  %v3192_v6 = vld [vmem:[%s5774_s4 + $0x460] sm:$0xff]  ;;  %v3194_v8 = vld [vmem:[%s5774_s4 + $0x470] sm:$0xf] }
 0x275   : > { %1676 = vmatmul.mubr.f32.gmra.mrb[22].mxu1 %v4870_v3 }
 0x276   : > { %3614 = vmatpush1.bf16.msra.mxu1 %v3613_v22  ;;  %3234 = vmatprep.mubr.msk.f32.mxu1 %vm1364_vm11, %v4621_v55  ;;  %v3621_v55 = vpack.c.bf16 %v3210_v31, %v3208_v30  ;;  %v3647_v22 = vpack.c.bf16 %v3162_v18, %v3160_v16  ;;  %v3168_v30 = vld [vmem:[%s5774_s4 + $0x3a0] sm:$0xff]  ;;  %v3170_v31 = vld [vmem:[%s5774_s4 + $0x3b0] sm:$0xff]  ;;  %v3680_v16 = vpack.c.bf16 %v3194_v8, %v3192_v6 }
 0x277   : > { %3616 = vmatprep.subr.bf16.mxu1 %v3615_v23  ;;  %v3649_v23 = vpack.c.bf16 %v3167_v21, %v3165_v20  ;;  %v3240_v20 = vld [vmem:[%s5774_s4 + $0x5a0] sm:$0xff]  ;;  %v3242_v21 = vld [vmem:[%s5774_s4 + $0x5b0] sm:$0xff] }
 0x27a   : > { %3618 = vmatpush1.bf16.msra.mxu1 %v3617_v28  ;;  %v3651_v28 = vpack.c.bf16 %v3166_v25, %v3164_v24  ;;  %v3685_v24 = vpack.c.bf16 %v3242_v21, %v3240_v20 }
 0x27b   : > { %3620 = vmatprep.subr.bf16.mxu1 %v3619_v29  ;;  %v3653_v29 = vpack.c.bf16 %v3171_v27, %v3169_v26  ;;  %v3244_v26 = vld [vmem:[%s5774_s4 + $0x5c0] sm:$0xff]  ;;  %v3246_v27 = vld [vmem:[%s5774_s4 + $0x5d0] sm:$0xff] }
 0x27e   : > { %3622 = vmatpush1.bf16.msra.mxu1 %v3621_v55  ;;  %v3172_v55 = vld [vmem:[%s5774_s4 + $0x3c0] sm:$0xff] }
 0x27f   : > { %3624 = vmatprep.subr.bf16.mxu1 %v3623_v34  ;;  %v3174_v34 = vld [vmem:[%s5774_s4 + $0x3d0] sm:$0xff] }
 0x282   : > { %3626 = vmatpush1.bf16.msra.mxu1 %v3625_v39  ;;  %v3181_v39 = vld [vmem:[%s5774_s4 + $0x408] sm:$0xff] }
 0x283   : > { %3628 = vmatprep.subr.bf16.mxu1 %v3627_v40  ;;  %v3183_v40 = vld [vmem:[%s5774_s4 + $0x418] sm:$0xff] }
 0x284   : > { %v3665_v42 = vpack.c.bf16 %v3183_v40, %v3181_v39  ;;  %v3703_v40 = vpack.c.bf16 %v3263_v38, %v3261_v37  ;;  %v2243_v37 = vld [vmem:[%s5777_s7 + $0x60] sm:$0xff]  ;;  %v2244_v38 = vld [vmem:[%s5777_s7 + $0x68] sm:$0xff] }
 0x286   : > { %3630 = vmatpush1.bf16.msra.mxu1 %v3629_v45  ;;  %v3185_v45 = vld [vmem:[%s5774_s4 + $0x428] sm:$0xff] }
 0x287   : > { %3632 = vmatprep.subr.bf16.mxu1 %v3631_v46  ;;  %v3187_v46 = vld [vmem:[%s5774_s4 + $0x438] sm:$0xff] }
 0x288   : > { %v3669_v49 = vpack.c.bf16 %v3187_v46, %v3185_v45  ;;  %v3707_v46 = vpack.c.bf16 %v3267_v44, %v3265_v43  ;;  %v2247_v43 = vld [vmem:[%s5777_s7 + $0x80] sm:$0xff]  ;;  %v2248_v44 = vld [vmem:[%s5777_s7 + $0x88] sm:$0xf] }
 0x28a   : > { %3634 = vmatpush1.bf16.msra.mxu1 %v3633_v53  ;;  %v3189_v53 = vld [vmem:[%s5774_s4 + $0x448] sm:$0xff] }
 0x28b   : > { %3636 = vmatprep.subr.bf16.mxu1 %v3635_v54  ;;  %v3191_v54 = vld [vmem:[%s5774_s4 + $0x458] sm:$0xff] }
 0x28c   : > { %v3673_v57 = vpack.c.bf16 %v3191_v54, %v3189_v53  ;;  %v3711_v54 = vpack.c.bf16 %v3271_v51, %v3269_v50 }
 0x28e   : > { %3638 = vmatpush1.bf16.msra.mxu1 %v3637_v61  ;;  %v3193_v61 = vld [vmem:[%s5774_s4 + $0x468] sm:$0xff] }
 0x28f   : > { %3641 = vmatprep.subr.msk.bf16.mxu1 %vm4235_vm3, %v3639_v63  ;;  %v3195_v63 = vld [vmem:[%s5774_s4 + $0x478] sm:$0xf] }
 0x290   : > { %v3677_v5 = vpack.c.bf16 %v3195_v63, %v3193_v61  ;;  %v3715_v63 = vpack.c.bf16 %v3275_v60, %v3273_v58  ;;  %v3289_v60 = vld [vmem:[%s5777_s7 + $0x90] sm:$0xff] }
 0x292   : > { %3644 = vmatpush1.bf16.msk.msra.mxu1 %vm4235_vm3, %v3642_v11  ;;  %v3241_v11 = vld [vmem:[%s5774_s4 + $0x5a8] sm:$0xff] }
 0x293   : > { %3646 = vmatprep.subr.bf16.mxu1 %v3645_v14  ;;  %v3243_v14 = vld [vmem:[%s5774_s4 + $0x5b8] sm:$0xff] }
 0x294   : > { %v3683_v18 = vpack.c.bf16 %v3243_v14, %v3241_v11 }
 0x295   : > { %1831 = vmatmul.mubr.f32.vlgmr.msra.gmra.mrb[24].mxu1 %v4632_v59  ;;  %v3655_v59 = vpack.c.bf16 %v3170_v31, %v3168_v30  ;;  %v3689_v30 = vpack.c.bf16 %v3246_v27, %v3244_v26  ;;  %v2054_v27 = vld [vmem:[%s5776_s6] sm:$0x7f] }
 0x296   : > { %3235 = vmatprep.mubr.msk.f32.mxu1 %vm1364_vm11, %v4618_v52  ;;  %3648 = vmatpush1.bf16.msra.mxu1 %v3647_v22  ;;  %v3175_v52 = vld [vmem:[%s5774_s4 + $0x3d8] sm:$0xff]  ;;  %v3245_v22 = vld [vmem:[%s5774_s4 + $0x5c8] sm:$0xff] }
 0x297   : > { %3650 = vmatprep.subr.bf16.mxu1 %v3649_v23  ;;  %v3657_v33 = vpack.c.bf16 %v3175_v52, %v3173_v32  ;;  %v3247_v23 = vld [vmem:[%s5774_s4 + $0x5d8] sm:$0xff]  ;;  %v3248_v32 = vld [vmem:[%s5774_s4 + $0x5e0] sm:$0xff]  ;;  %v3250_v52 = vld [vmem:[%s5774_s4 + $0x5f0] sm:$0xff] }
 0x298   : > { %v3687_v25 = vpack.c.bf16 %v3247_v23, %v3245_v22 }
 0x299   : > { %1837 = vmatmul.mubr.f32.gmra.mrb[26].mxu1 %v4610_v48  ;;  %v3179_v48 = vld [vmem:[%s5774_s4 + $0x3f8] sm:$0xff] }
 0x29a   : > { %3652 = vmatpush1.bf16.msra.mxu1 %v3651_v28  ;;  %3238 = vmatprep.mubr.msk.f32.mxu1 %vm1364_vm11, %v4656_v4  ;;  %v3659_v4 = vpack.c.bf16 %v3174_v34, %v3172_v55  ;;  %v3661_v36 = vpack.c.bf16 %v3179_v48, %v3177_v35  ;;  %v3249_v28 = vld [vmem:[%s5774_s4 + $0x5e8] sm:$0xff]  ;;  %v3252_v55 = vld [vmem:[%s5774_s4 + $0x600] sm:$0xff]  ;;  %v3254_v34 = vld [vmem:[%s5774_s4 + $0x610] sm:$0xff] }
 0x29b   : > { %3654 = vmatprep.subr.bf16.mxu1 %v3653_v29  ;;  %v3251_v29 = vld [vmem:[%s5774_s4 + $0x5f8] sm:$0xff]  ;;  %v3257_v35 = vld [vmem:[%s5774_s4 + $0x628] sm:$0xff] }
 0x29c   : > { %v3691_v31 = vpack.c.bf16 %v3251_v29, %v3249_v28  ;;  %v3283_v28 = vld [vmem:[%s5776_s6 + $0x8] sm:$0x7f] }
 0x29e   : > { %3656 = vmatpush1.bf16.msra.mxu1 %v3655_v59  ;;  %v3253_v59 = vld [vmem:[%s5774_s4 + $0x608] sm:$0xff] }
 0x29f   : > { %3658 = vmatprep.subr.bf16.mxu1 %v3657_v33 }
 0x2a2   : > { %3660 = vmatpush1.bf16.msra.mxu1 %v3659_v4  ;;  %v3256_v4 = vld [vmem:[%s5774_s4 + $0x620] sm:$0xff] }
 0x2a3   : > { %3662 = vmatprep.subr.bf16.mxu1 %v3661_v36  ;;  %v3258_v36 = vld [vmem:[%s5774_s4 + $0x630] sm:$0xff] }
 0x2a4   : > { %v3701_v39 = vpack.c.bf16 %v3258_v36, %v3256_v4  ;;  %v2242_v4 = vld [vmem:[%s5777_s7 + $0x58] sm:$0xff] }
 0x2a6   : > { %3664 = vmatpush1.bf16.msra.mxu1 %v3663_v41  ;;  %v3260_v41 = vld [vmem:[%s5774_s4 + $0x640] sm:$0xff] }
 0x2a7   : > { %3666 = vmatprep.subr.bf16.mxu1 %v3665_v42  ;;  %v3262_v42 = vld [vmem:[%s5774_s4 + $0x650] sm:$0xff] }
 0x2a8   : > { %v3705_v45 = vpack.c.bf16 %v3262_v42, %v3260_v41  ;;  %v2246_v41 = vld [vmem:[%s5777_s7 + $0x78] sm:$0xff] }
 0x2aa   : > { %3668 = vmatpush1.bf16.msra.mxu1 %v3667_v47  ;;  %v3264_v47 = vld [vmem:[%s5774_s4 + $0x660] sm:$0xff] }
 0x2ab   : > { %3670 = vmatprep.subr.bf16.mxu1 %v3669_v49  ;;  %v3266_v49 = vld [vmem:[%s5774_s4 + $0x670] sm:$0xff] }
 0x2ac   : > { %v3709_v53 = vpack.c.bf16 %v3266_v49, %v3264_v47 }
 0x2ae   : > { %3672 = vmatpush1.bf16.msra.mxu1 %v3671_v56  ;;  %v3268_v56 = vld [vmem:[%s5774_s4 + $0x680] sm:$0xff] }
 0x2af   : > { %3674 = vmatprep.subr.bf16.mxu1 %v3673_v57  ;;  %v3270_v57 = vld [vmem:[%s5774_s4 + $0x690] sm:$0xff] }
 0x2b0   : > { %v3713_v61 = vpack.c.bf16 %v3270_v57, %v3268_v56 }
 0x2b2   : > { %3676 = vmatpush1.bf16.msra.mxu1 %v3675_v0  ;;  %v3272_v0 = vld [vmem:[%s5774_s4 + $0x6a0] sm:$0xff] }
 0x2b3   : > { %3679 = vmatprep.subr.msk.bf16.mxu1 %vm4235_vm3, %v3677_v5  ;;  %v3274_v5 = vld [vmem:[%s5774_s4 + $0x6b0] sm:$0xf] }
 0x2b4   : > { %v3718_v6 = vpack.c.bf16 %v3274_v5, %v3272_v0 }
 0x2b6   : > { %3682 = vmatpush1.bf16.msk.msra.mxu1 %vm4235_vm3, %v3680_v16 }
 0x2b7   : > { %3684 = vmatprep.subr.bf16.mxu1 %v3683_v18 }
 0x2b9   : > { %1914 = vmatmul.mubr.f32.vlgmr.msra.gmra.mrb[24].mxu1 %v4757_v62  ;;  %v3255_v62 = vld [vmem:[%s5774_s4 + $0x618] sm:$0xff] }
 0x2ba   : > { %3239 = vmatprep.mubr.msk.f32.mxu1 %vm1364_vm11, %v4763_v1  ;;  %3686 = vmatpush1.bf16.msra.mxu1 %v3685_v24  ;;  %v3693_v1 = vpack.c.bf16 %v3250_v52, %v3248_v32  ;;  %v3695_v33 = vpack.c.bf16 %v3255_v62, %v3253_v59  ;;  %v2234_v32 = vld [vmem:[%s5777_s7 + $0x18] sm:$0xff]  ;;  %v2235_v59 = vld [vmem:[%s5777_s7 + $0x20] sm:$0xff]  ;;  %v2236_v62 = vld [vmem:[%s5777_s7 + $0x28] sm:$0xff] }
 0x2bb   : > { %3688 = vmatprep.subr.bf16.mxu1 %v3687_v25 }
 0x2bd   : > { %1920 = vmatmul.mubr.f32.gmra.mrb[26].mxu1 %v4775_v13  ;;  %v3259_v13 = vld [vmem:[%s5774_s4 + $0x638] sm:$0xff] }
 0x2be   : > { %3690 = vmatpush1.bf16.msra.mxu1 %v3689_v30  ;;  %3278 = vmatprep.mubr.msk.f32.mxu1 %vm1364_vm11, %v4786_v17  ;;  %v3697_v17 = vpack.c.bf16 %v3254_v34, %v3252_v55  ;;  %v3699_v48 = vpack.c.bf16 %v3259_v13, %v3257_v35  ;;  %v4098_v30 = vmov 0.0|0.0   ;;  %v2238_v55 = vld [vmem:[%s5777_s7 + $0x38] sm:$0xff]  ;;  %v2239_v35 = vld [vmem:[%s5777_s7 + $0x40] sm:$0xff]  ;;  %v2240_v13 = vld [vmem:[%s5777_s7 + $0x48] sm:$0xff] }
 0x2bf   : > { %3692 = vmatprep.subr.bf16.mxu1 %v3691_v31  ;;  %v2233_v31 = vld [vmem:[%s5777_s7 + $0x10] sm:$0xff] }
 0x2c0   : > { %v3737_v52 = vpack.c.bf16 %v2234_v32, %v2233_v31  ;;  %v3305_v31 = vld [vmem:[%s5777_s7 + $0x110] sm:$0xff]  ;;  %v3306_v32 = vld [vmem:[%s5777_s7 + $0x118] sm:$0xf] }
 0x2c2   : > { %3694 = vmatpush1.bf16.msra.mxu1 %v3693_v1  ;;  %v3740_v1 = vpack.c.bf16 %v2236_v62, %v2235_v59  ;;  %v3309_v59 = vld [vmem:[%s5777_s7 + $0x120] sm:$0xff]  ;;  %v3310_v62 = vld [vmem:[%s5777_s7 + $0x128] sm:$0xff] }
 0x2c3   : > { %3696 = vmatprep.subr.bf16.mxu1 %v3695_v33  ;;  %v2237_v33 = vld [vmem:[%s5777_s7 + $0x30] sm:$0xff] }
 0x2c4   : > { %v3743_v34 = vpack.c.bf16 %v2238_v55, %v2237_v33  ;;  %v3311_v55 = vld [vmem:[%s5777_s7 + $0x130] sm:$0xff] }
 0x2c6   : > { %3698 = vmatpush1.bf16.msra.mxu1 %v3697_v17  ;;  %v3746_v17 = vpack.c.bf16 %v2240_v13, %v2239_v35 }
 0x2c7   : > { %3700 = vmatprep.subr.bf16.mxu1 %v3699_v48  ;;  %v2241_v48 = vld [vmem:[%s5777_s7 + $0x50] sm:$0xff] }
 0x2c8   : > { %v3749_v36 = vpack.c.bf16 %v2242_v4, %v2241_v48  ;;  %v3314_v48 = vld [vmem:[%s5777_s7 + $0x148] sm:$0xff] }
 0x2ca   : > { %3702 = vmatpush1.bf16.msra.mxu1 %v3701_v39  ;;  %v3752_v39 = vpack.c.bf16 %v2244_v38, %v2243_v37  ;;  %v3316_v37 = vld [vmem:[%s5777_s7 + $0x158] sm:$0xff] }
 0x2cb   : > { %3704 = vmatprep.subr.bf16.mxu1 %v3703_v40  ;;  %v2245_v40 = vld [vmem:[%s5777_s7 + $0x70] sm:$0xff] }
 0x2cc   : > { %v3755_v42 = vpack.c.bf16 %v2246_v41, %v2245_v40  ;;  %v3318_v40 = vld [vmem:[%s5777_s7 + $0x168] sm:$0xff] }
 0x2ce   : > { %3706 = vmatpush1.bf16.msra.mxu1 %v3705_v45  ;;  %v3758_v45 = vpack.c.bf16 %v2248_v44, %v2247_v43  ;;  %v3320_v43 = vld [vmem:[%s5777_s7 + $0x178] sm:$0xff] }
 0x2cf   : > { %3708 = vmatprep.subr.bf16.mxu1 %v3707_v46  ;;  %v2214_v46 = vld [vmem:[%s5775_s5] sm:$0x3] }
 0x2d0   : > { %v2219_v47 = vrot.slane %v2214_v46, %v1224_v10  ;;  %v2223_v51 = vrot.slane %v2214_v46, %v1228_v12  ;;  %v3292_v12 = vld [vmem:[%s5777_s7 + $0xa8] sm:$0xff] }
 0x2d1   : > { %v3322_v46 = vld [vmem:[%s5777_s7 + $0x188] sm:$0xff] }
 0x2d2   : > { %3710 = vmatpush1.bf16.msra.mxu1 %v3709_v53 }
 0x2d3   : > { %3712 = vmatprep.subr.bf16.mxu1 %v3711_v54 }
 0x2d6   : > { %3714 = vmatpush1.bf16.msra.mxu1 %v3713_v61  ;;  %v3290_v61 = vld [vmem:[%s5777_s7 + $0x98] sm:$0xff] }
 0x2d7   : > { %3717 = vmatprep.subr.msk.bf16.mxu1 %vm4235_vm3, %v3715_v63  ;;  %v3762_v0 = vpack.c.bf16 %v3290_v61, %v3289_v60 }
 0x2da   : > { %3720 = vmatpush1.bf16.msk.msra.mxu1 %vm4235_vm3, %v3718_v6 }
 0x2dd   : > { %2034 = vmatmul.mubr.f32.vlgmr.msra.gmra.mrb[24].mxu1 %v4888_v19 }
 0x2de   : > { %3279 = vmatprep.mubr.msk.f32.mxu1 %vm1364_vm11, %v4765_v2 }
 0x2e1   : > { %2040 = vmatmul.mubr.f32.gmra.mrb[26].mxu1 %v4870_v3  ;;  %v2232_v3 = vld [vmem:[%s5777_s7 + $0x8] sm:$0xff] }
 0x2e2   : > { %2205 = vmatprep.mubr.f32.mxu1 %v4096_v7  ;;  %v2231_v7 = vld [vmem:[%s5777_s7] sm:$0xff] }
 0x2e3   : > { %v3734_v29 = vpack.c.bf16 %v2232_v3, %v2231_v7  ;;  %v3302_v7 = vld [vmem:[%s5777_s7 + $0xf8] sm:$0xff] }
 0x344   : > { %v1671_v8 = vpop.f32.mrb[20].mxu1 }
 0x345   : > { %v1673_v11 = vpop.f32.mrb[21].mxu1 }
 0x348   : > { %v1677_v14 = vpop.f32.mrb[22].mxu1 }
 0x349   : > { %v1679_v16 = vpop.f32.mrb[23].mxu1 }
 0x3b0   : > { %v2035_v18 = vpop.f32.mrb[24].mxu1 }
 0x3b1   : > { %v2050_v20 = vmax.f32 %v1671_v8, %v2035_v18  ;;  %v2037_v21 = vpop.f32.mrb[25].mxu1  ;;  %v3765_v8 = vpack.c.bf16 %v3292_v12, %v3291_v9  ;;  %v3295_v18 = vld [vmem:[%s5777_s7 + $0xc0] sm:$0xff] }
 0x3b2   : > { %v2051_v22 = vmax.f32 %v1673_v11, %v2037_v21  ;;  %v3293_v11 = vld [vmem:[%s5777_s7 + $0xb0] sm:$0xff] }
 0x3b4   : > { %v2041_v23 = vpop.f32.mrb[26].mxu1 }
 0x3b5   : > { %v2052_v24 = vmax.f32 %v1677_v14, %v2041_v23  ;;  %v2043_v25 = vpop.f32.mrb[27].mxu1  ;;  %v3294_v14 = vld [vmem:[%s5777_s7 + $0xb8] sm:$0xff] }
 0x3b6   : > { %v2053_v26 = vmax.f32 %v1679_v16, %v2043_v25  ;;  %v3768_v16 = vpack.c.bf16 %v3294_v14, %v3293_v11  ;;  %v3298_v23 = vld [vmem:[%s5777_s7 + $0xd8] sm:$0xff]  ;;  %v3299_v25 = vld [vmem:[%s5777_s7 + $0xe0] sm:$0xff] }
 0x3b7   : > { %v3724_v19 = vpack.c.bf16 %v2052_v24, %v2050_v20  ;;  %v3296_v20 = vld [vmem:[%s5777_s7 + $0xc8] sm:$0xff]  ;;  %v3335_v14 = vld [vmem:[%s5777_s7 + $0x1e0] sm:$0xff] }
 0x3b8   : > { %v3721_v2 = vpack.c.bf16 %v2053_v26, %v2051_v22  ;;  %v3771_v21 = vpack.c.bf16 %v3296_v20, %v3295_v18  ;;  %v3297_v22 = vld [vmem:[%s5777_s7 + $0xd0] sm:$0xff]  ;;  %v3300_v26 = vld [vmem:[%s5777_s7 + $0xe8] sm:$0xff] }
 0x3b9   : > { %v3774_v24 = vpack.c.bf16 %v3298_v23, %v3297_v22  ;;  %v3337_v20 = vld [vmem:[%s5777_s7 + $0x1f0] sm:$0xff]  ;;  %v3339_v23 = vld [vmem:[%s5777_s7 + $0x200] sm:$0xff] }
 0x3ba   : > { %3723 = vmatprep.subr.msk.bf16.mxu0 %vm3722_vm13, %v3721_v2  ;;  %3729 = vmatprep.subr.msk.bf16.mxu1 %vm3722_vm13, %v3721_v2  ;;  %v3301_v2 = vld [vmem:[%s5777_s7 + $0xf0] sm:$0xff] }
 0x3bb   : > { %3726 = vmatpush1.bf16.msk.msra.mxu0 %vm3722_vm13, %v3724_v19  ;;  %3732 = vmatpush1.bf16.msk.msra.mxu1 %vm3722_vm13, %v3724_v19  ;;  %v3777_v19 = vpack.c.bf16 %v3300_v26, %v3299_v25  ;;  %v3780_v3 = vpack.c.bf16 %v3302_v7, %v3301_v2  ;;  %v3341_v26 = vld [vmem:[%s5777_s7 + $0x210] sm:$0xff]  ;;  %v3343_v7 = vld [vmem:[%s5777_s7 + $0x220] sm:$0xff] }
 0x3bc   : > { %3733 = vmatprep.subr.bf16.mxu0 %v4098_v30 }
 0x3be   : > { %3282 = vmatmul.mubr.msk.f32.vlgmr.msra.gmra.mrb[12].mxu0 %vm2055_vm14, %v2054_v27  ;;  %3286 = vmatmul.mubr.msk.f32.vlgmr.msra.gmra.mrb[28].mxu1 %vm2055_vm14, %v3283_v28  ;;  %v3303_v27 = vld [vmem:[%s5777_s7 + $0x100] sm:$0xff]  ;;  %v3304_v28 = vld [vmem:[%s5777_s7 + $0x108] sm:$0xff] }
 0x3bf   : > { %3735 = vmatpush1.bf16.msra.mxu0 %v3734_v29  ;;  %v3783_v29 = vpack.c.bf16 %v3304_v28, %v3303_v27  ;;  %v3345_v28 = vld [vmem:[%s5777_s7 + $0x230] sm:$0xff] }
 0x3c0   : > { %3736 = vmatprep.subr.bf16.mxu0 %v4098_v30 }
 0x3c3   : > { %3738 = vmatpush1.bf16.msra.mxu0 %v3737_v52  ;;  %v3786_v52 = vpack.c.bf16 %v3306_v32, %v3305_v31  ;;  %v3349_v32 = vld [vmem:[%s5777_s7 + $0x240] sm:$0xff] }
 0x3c4   : > { %3739 = vmatprep.subr.bf16.mxu0 %v4098_v30 }
 0x3c7   : > { %3741 = vmatpush1.bf16.msra.mxu0 %v3740_v1  ;;  %v3790_v1 = vpack.c.bf16 %v3310_v62, %v3309_v59 }
 0x3c8   : > { %3742 = vmatprep.subr.bf16.mxu0 %v4098_v30 }
 0x3cb   : > { %3744 = vmatpush1.bf16.msra.mxu0 %v3743_v34  ;;  %v3312_v34 = vld [vmem:[%s5777_s7 + $0x138] sm:$0xff] }
 0x3cc   : > { %3745 = vmatprep.subr.bf16.mxu0 %v4098_v30  ;;  %v3793_v13 = vpack.c.bf16 %v3312_v34, %v3311_v55 }
 0x3cf   : > { %3747 = vmatpush1.bf16.msra.mxu0 %v3746_v17  ;;  %v3313_v17 = vld [vmem:[%s5777_s7 + $0x140] sm:$0xff] }
 0x3d0   : > { %3748 = vmatprep.subr.bf16.mxu0 %v4098_v30  ;;  %v3796_v4 = vpack.c.bf16 %v3314_v48, %v3313_v17  ;;  %v3355_v48 = vld [vmem:[%s5777_s7 + $0x270] sm:$0xff] }
 0x3d3   : > { %3750 = vmatpush1.bf16.msra.mxu0 %v3749_v36  ;;  %v3315_v36 = vld [vmem:[%s5777_s7 + $0x150] sm:$0xff] }
 0x3d4   : > { %3751 = vmatprep.subr.bf16.mxu0 %v4098_v30  ;;  %v3799_v38 = vpack.c.bf16 %v3316_v37, %v3315_v36  ;;  %v3357_v37 = vld [vmem:[%s5777_s7 + $0x280] sm:$0xff] }
 0x3d7   : > { %3753 = vmatpush1.bf16.msra.mxu0 %v3752_v39  ;;  %v3317_v39 = vld [vmem:[%s5777_s7 + $0x160] sm:$0xff] }
 0x3d8   : > { %3754 = vmatprep.subr.bf16.mxu0 %v4098_v30  ;;  %v3802_v41 = vpack.c.bf16 %v3318_v40, %v3317_v39  ;;  %v3359_v40 = vld [vmem:[%s5777_s7 + $0x290] sm:$0xff] }
 0x3db   : > { %3756 = vmatpush1.bf16.msra.mxu0 %v3755_v42  ;;  %v3319_v42 = vld [vmem:[%s5777_s7 + $0x170] sm:$0xff] }
 0x3dc   : > { %3757 = vmatprep.subr.bf16.mxu0 %v4098_v30  ;;  %v3805_v44 = vpack.c.bf16 %v3320_v43, %v3319_v42  ;;  %v3361_v43 = vld [vmem:[%s5777_s7 + $0x2a0] sm:$0xff] }
 0x3df   : > { %3760 = vmatpush1.bf16.msk.msra.mxu0 %vm4235_vm3, %v3758_v45  ;;  %v3321_v45 = vld [vmem:[%s5777_s7 + $0x180] sm:$0xff] }
 0x3e0   : > { %3761 = vmatprep.subr.bf16.mxu0 %v4098_v30 }
 0x491   : > { %v2131_v49 = vpop.f32.mrb[12].mxu0  ;;  %v2207_v50 = vpop.f32.mrb[28].mxu1 }
 0x492   : > { %v2212_v53 = vmax.f32 %v2131_v49, %v2207_v50  ;;  %v2133_v54 = vpop.f32.mrb[13].mxu0  ;;  %v2209_v56 = vpop.f32.mrb[29].mxu1  ;;  %v3323_v49 = vld [vmem:[%s5777_s7 + $0x190] sm:$0xff]  ;;  %v3324_v50 = vld [vmem:[%s5777_s7 + $0x198] sm:$0xff] }
 0x493   : > { %v2213_v57 = vmax.f32 %v2133_v54, %v2209_v56  ;;  %v3326_v54 = vld [vmem:[%s5777_s7 + $0x1a8] sm:$0xf] }
 0x494   : > { %v2226_v58 = vadd.f32 %v2219_v47, %v2212_v53  ;;  %v3808_v47 = vpack.c.bf16 %v3322_v46, %v3321_v45  ;;  %v3325_v53 = vld [vmem:[%s5777_s7 + $0x1a0] sm:$0xff]  ;;  %v3363_v46 = vld [vmem:[%s5777_s7 + $0x2b0] sm:$0xff] }
 0x495   : > { %v2227_v63 = vadd.f32 %v2223_v51, %v2213_v57  ;;  %v3811_v51 = vpack.c.bf16 %v3324_v50, %v3323_v49  ;;  %v3814_v56 = vpack.c.bf16 %v3326_v54, %v3325_v53  ;;  %v3329_v57 = vld [vmem:[%s5777_s7 + $0x1b0] sm:$0xff]  ;;  %v3365_v50 = vld [vmem:[%s5777_s7 + $0x2c0] sm:$0xff] }
 0x496   : > { %v5314_v5 = vmax.f32 %v2226_v58, 0.0  ;;  %v3330_v58 = vld [vmem:[%s5777_s7 + $0x1b8] sm:$0xff]  ;;  %v3369_v54 = vld [vmem:[%s5777_s7 + $0x2d0] sm:$0xff] }
 0x497   : > { %v5312_v10 = vmax.f32 %v2227_v63, 0.0  ;;  %v3818_v60 = vpack.c.bf16 %v3330_v58, %v3329_v57  ;;  %v3331_v63 = vld [vmem:[%s5777_s7 + $0x1c0] sm:$0xff] }
 0x498   : > { %v2346_v33 = vrot.slane %v5314_v5, 1  ;;  %v2444_v61 = vrot.slane %v5314_v5, 2  ;;  %v2542_v62 = vrot.slane %v5314_v5, 3  ;;  %v2640_v58 = vrot.slane %v5314_v5, 4 }
 0x499   : > { %3288 = vmatprep.mubr.msk.f32.mxu0 %vm1364_vm11, %v5312_v10  ;;  %v2347_v6 = vrot.slane %v5312_v10, 1  ;;  %v2445_v35 = vrot.slane %v5312_v10, 2  ;;  %v2543_v9 = vrot.slane %v5312_v10, 3  ;;  %v2641_v55 = vrot.slane %v5312_v10, 4 }
 0x49a   : > { %2320 = vmatmul.mubr.f32.vlgmr.msra.gmra.mrb[14].mxu0 %v5314_v5 }
 0x49b   : > { %3763 = vmatpush1.bf16.msra.mxu0 %v3762_v0  ;;  %3308 = vmatprep.mubr.msk.f32.mxu0 %vm1364_vm11, %v2347_v6  ;;  %v3332_v0 = vld [vmem:[%s5777_s7 + $0x1c8] sm:$0xff]  ;;  %v3333_v6 = vld [vmem:[%s5777_s7 + $0x1d0] sm:$0xff] }
 0x49c   : > { %3764 = vmatprep.subr.bf16.mxu0 %v4098_v30  ;;  %v3821_v12 = vpack.c.bf16 %v3332_v0, %v3331_v63  ;;  %v2739_v63 = vrot.slane %v5312_v10, 5 }
 0x49f   : > { %3766 = vmatpush1.bf16.msra.mxu0 %v3765_v8  ;;  %v3334_v8 = vld [vmem:[%s5777_s7 + $0x1d8] sm:$0xff] }
 0x4a0   : > { %3767 = vmatprep.subr.bf16.mxu0 %v4098_v30  ;;  %v3824_v11 = vpack.c.bf16 %v3334_v8, %v3333_v6  ;;  %v3375_v8 = vld [vmem:[%s5777_s7 + $0x300] sm:$0xff] }
 0x4a3   : > { %3769 = vmatpush1.bf16.msra.mxu0 %v3768_v16  ;;  %v3336_v16 = vld [vmem:[%s5777_s7 + $0x1e8] sm:$0xff] }
 0x4a4   : > { %3770 = vmatprep.subr.bf16.mxu0 %v4098_v30  ;;  %v3827_v18 = vpack.c.bf16 %v3336_v16, %v3335_v14  ;;  %v3377_v16 = vld [vmem:[%s5777_s7 + $0x310] sm:$0xff] }
 0x4a7   : > { %3772 = vmatpush1.bf16.msra.mxu0 %v3771_v21  ;;  %v3338_v21 = vld [vmem:[%s5777_s7 + $0x1f8] sm:$0xff] }
 0x4a8   : > { %3773 = vmatprep.subr.bf16.mxu0 %v4098_v30  ;;  %v3830_v22 = vpack.c.bf16 %v3338_v21, %v3337_v20  ;;  %v3379_v21 = vld [vmem:[%s5777_s7 + $0x320] sm:$0xff] }
 0x4ab   : > { %3775 = vmatpush1.bf16.msra.mxu0 %v3774_v24  ;;  %v3340_v24 = vld [vmem:[%s5777_s7 + $0x208] sm:$0xff] }
 0x4ac   : > { %3776 = vmatprep.subr.bf16.mxu0 %v4098_v30  ;;  %v3833_v25 = vpack.c.bf16 %v3340_v24, %v3339_v23  ;;  %v3381_v24 = vld [vmem:[%s5777_s7 + $0x330] sm:$0xff] }
 0x4af   : > { %3778 = vmatpush1.bf16.msra.mxu0 %v3777_v19  ;;  %v3342_v19 = vld [vmem:[%s5777_s7 + $0x218] sm:$0xff] }
 0x4b0   : > { %3779 = vmatprep.subr.bf16.mxu0 %v4098_v30  ;;  %v3836_v2 = vpack.c.bf16 %v3342_v19, %v3341_v26  ;;  %v3383_v19 = vld [vmem:[%s5777_s7 + $0x340] sm:$0xff] }
 0x4b3   : > { %3781 = vmatpush1.bf16.msra.mxu0 %v3780_v3  ;;  %v3344_v3 = vld [vmem:[%s5777_s7 + $0x228] sm:$0xff] }
 0x4b4   : > { %3782 = vmatprep.subr.bf16.mxu0 %v4098_v30  ;;  %v3839_v27 = vpack.c.bf16 %v3344_v3, %v3343_v7  ;;  %v3385_v3 = vld [vmem:[%s5777_s7 + $0x350] sm:$0xff] }
 0x4b7   : > { %3784 = vmatpush1.bf16.msra.mxu0 %v3783_v29  ;;  %v3346_v29 = vld [vmem:[%s5777_s7 + $0x238] sm:$0xf] }
 0x4b8   : > { %3785 = vmatprep.subr.bf16.mxu0 %v4098_v30  ;;  %v3842_v31 = vpack.c.bf16 %v3346_v29, %v3345_v28  ;;  %v3389_v29 = vld [vmem:[%s5777_s7 + $0x360] sm:$0xff] }
 0x4bb   : > { %3788 = vmatpush1.bf16.msk.msra.mxu0 %vm4235_vm3, %v3786_v52  ;;  %v3350_v52 = vld [vmem:[%s5777_s7 + $0x248] sm:$0xff] }
 0x4bc   : > { %3789 = vmatprep.subr.bf16.mxu0 %v4098_v30  ;;  %v3846_v59 = vpack.c.bf16 %v3350_v52, %v3349_v32  ;;  %v2738_v52 = vrot.slane %v5314_v5, 5 }
 0x4be   : > { %2419 = vmatmul.mubr.f32.vlgmr.msra.gmra.mrb[14].mxu0 %v2346_v33  ;;  %v3352_v33 = vld [vmem:[%s5777_s7 + $0x258] sm:$0xff] }
 0x4bf   : > { %3791 = vmatpush1.bf16.msra.mxu0 %v3790_v1  ;;  %3328 = vmatprep.mubr.msk.f32.mxu0 %vm1364_vm11, %v2445_v35  ;;  %v3351_v1 = vld [vmem:[%s5777_s7 + $0x250] sm:$0xff]  ;;  %v3353_v35 = vld [vmem:[%s5777_s7 + $0x260] sm:$0xff] }
 0x4c0   : > { %3792 = vmatprep.subr.bf16.mxu0 %v4098_v30  ;;  %v3849_v34 = vpack.c.bf16 %v3352_v33, %v3351_v1  ;;  %v2837_v1 = vrot.slane %v5312_v10, 6  ;;  %v3395_v10 = vld [vmem:[%s5777_s7 + $0x390] sm:$0xff] }
 0x4c3   : > { %3794 = vmatpush1.bf16.msra.mxu0 %v3793_v13  ;;  %v3354_v13 = vld [vmem:[%s5777_s7 + $0x268] sm:$0xff] }
 0x4c4   : > { %3795 = vmatprep.subr.bf16.mxu0 %v4098_v30  ;;  %v3852_v17 = vpack.c.bf16 %v3354_v13, %v3353_v35  ;;  %v3396_v13 = vld [vmem:[%s5777_s7 + $0x398] sm:$0xff] }
 0x4c7   : > { %3797 = vmatpush1.bf16.msra.mxu0 %v3796_v4  ;;  %v3356_v4 = vld [vmem:[%s5777_s7 + $0x278] sm:$0xff] }
 0x4c8   : > { %3798 = vmatprep.subr.bf16.mxu0 %v4098_v30  ;;  %v3855_v36 = vpack.c.bf16 %v3356_v4, %v3355_v48  ;;  %v3397_v48 = vld [vmem:[%s5777_s7 + $0x3a0] sm:$0xff]  ;;  %v3398_v4 = vld [vmem:[%s5777_s7 + $0x3a8] sm:$0xff] }
 0x4cb   : > { %3800 = vmatpush1.bf16.msra.mxu0 %v3799_v38  ;;  %v3358_v38 = vld [vmem:[%s5777_s7 + $0x288] sm:$0xff] }
 0x4cc   : > { %3801 = vmatprep.subr.bf16.mxu0 %v4098_v30  ;;  %v3858_v39 = vpack.c.bf16 %v3358_v38, %v3357_v37  ;;  %v3399_v37 = vld [vmem:[%s5777_s7 + $0x3b0] sm:$0xff]  ;;  %v3400_v38 = vld [vmem:[%s5777_s7 + $0x3b8] sm:$0xff] }
 0x4cf   : > { %3803 = vmatpush1.bf16.msra.mxu0 %v3802_v41  ;;  %v3360_v41 = vld [vmem:[%s5777_s7 + $0x298] sm:$0xff] }
 0x4d0   : > { %3804 = vmatprep.subr.bf16.mxu0 %v4098_v30  ;;  %v3861_v42 = vpack.c.bf16 %v3360_v41, %v3359_v40  ;;  %v3401_v40 = vld [vmem:[%s5777_s7 + $0x3c0] sm:$0xff]  ;;  %v3402_v41 = vld [vmem:[%s5777_s7 + $0x3c8] sm:$0xff] }
 0x4d3   : > { %3806 = vmatpush1.bf16.msra.mxu0 %v3805_v44  ;;  %v3362_v44 = vld [vmem:[%s5777_s7 + $0x2a8] sm:$0xff] }
 0x4d4   : > { %3807 = vmatprep.subr.bf16.mxu0 %v4098_v30  ;;  %v3864_v45 = vpack.c.bf16 %v3362_v44, %v3361_v43  ;;  %v3403_v43 = vld [vmem:[%s5777_s7 + $0x3d0] sm:$0xff]  ;;  %v3404_v44 = vld [vmem:[%s5777_s7 + $0x3d8] sm:$0xff] }
 0x4d7   : > { %3809 = vmatpush1.bf16.msra.mxu0 %v3808_v47  ;;  %v3364_v47 = vld [vmem:[%s5777_s7 + $0x2b8] sm:$0xff] }
 0x4d8   : > { %3810 = vmatprep.subr.bf16.mxu0 %v4098_v30  ;;  %v3867_v49 = vpack.c.bf16 %v3364_v47, %v3363_v46  ;;  %v3405_v46 = vld [vmem:[%s5777_s7 + $0x3e0] sm:$0xff]  ;;  %v3406_v47 = vld [vmem:[%s5777_s7 + $0x3e8] sm:$0xf] }
 0x4db   : > { %3812 = vmatpush1.bf16.msra.mxu0 %v3811_v51  ;;  %v3366_v51 = vld [vmem:[%s5777_s7 + $0x2c8] sm:$0xf] }
 0x4dc   : > { %3813 = vmatprep.subr.bf16.mxu0 %v4098_v30  ;;  %v3870_v53 = vpack.c.bf16 %v3366_v51, %v3365_v50  ;;  %v2836_v50 = vrot.slane %v5314_v5, 6  ;;  %v2230_v51 = vld [vmem:[%s5778_s8] sm:$0x1] }
 0x4df   : > { %3816 = vmatpush1.bf16.msk.msra.mxu0 %vm4235_vm3, %v3814_v56  ;;  %v3370_v56 = vld [vmem:[%s5777_s7 + $0x2d8] sm:$0xff] }
 0x4e0   : > { %3817 = vmatprep.subr.bf16.mxu0 %v4098_v30  ;;  %v3874_v57 = vpack.c.bf16 %v3370_v56, %v3369_v54 }
 0x4e2   : > { %2517 = vmatmul.mubr.f32.vlgmr.msra.gmra.mrb[14].mxu0 %v2444_v61  ;;  %v3372_v61 = vld [vmem:[%s5777_s7 + $0x2e8] sm:$0xff] }
 0x4e3   : > { %3819 = vmatpush1.bf16.msra.mxu0 %v3818_v60  ;;  %3348 = vmatprep.mubr.msk.f32.mxu0 %vm1364_vm11, %v2543_v9  ;;  %v3371_v60 = vld [vmem:[%s5777_s7 + $0x2e0] sm:$0xff]  ;;  %v3373_v9 = vld [vmem:[%s5777_s7 + $0x2f0] sm:$0xff] }
 0x4e4   : > { %3820 = vmatprep.subr.bf16.mxu0 %v4098_v30  ;;  %v3877_v0 = vpack.c.bf16 %v3372_v61, %v3371_v60 }
 0x4e7   : > { %3822 = vmatpush1.bf16.msra.mxu0 %v3821_v12  ;;  %v3374_v12 = vld [vmem:[%s5777_s7 + $0x2f8] sm:$0xff] }
 0x4e8   : > { %3823 = vmatprep.subr.bf16.mxu0 %v4098_v30  ;;  %v3880_v6 = vpack.c.bf16 %v3374_v12, %v3373_v9 }
 0x4eb   : > { %3825 = vmatpush1.bf16.msra.mxu0 %v3824_v11  ;;  %v3376_v11 = vld [vmem:[%s5777_s7 + $0x308] sm:$0xff] }
 0x4ec   : > { %3826 = vmatprep.subr.bf16.mxu0 %v4098_v30  ;;  %v3883_v14 = vpack.c.bf16 %v3376_v11, %v3375_v8 }
 0x4ef   : > { %3828 = vmatpush1.bf16.msra.mxu0 %v3827_v18  ;;  %v3378_v18 = vld [vmem:[%s5777_s7 + $0x318] sm:$0xff] }
 0x4f0   : > { %3829 = vmatprep.subr.bf16.mxu0 %v4098_v30  ;;  %v3886_v20 = vpack.c.bf16 %v3378_v18, %v3377_v16 }
 0x4f3   : > { %3831 = vmatpush1.bf16.msra.mxu0 %v3830_v22  ;;  %v3380_v22 = vld [vmem:[%s5777_s7 + $0x328] sm:$0xff] }
 0x4f4   : > { %3832 = vmatprep.subr.bf16.mxu0 %v4098_v30  ;;  %v3889_v23 = vpack.c.bf16 %v3380_v22, %v3379_v21 }
 0x4f7   : > { %3834 = vmatpush1.bf16.msra.mxu0 %v3833_v25  ;;  %v3382_v25 = vld [vmem:[%s5777_s7 + $0x338] sm:$0xff] }
 0x4f8   : > { %3835 = vmatprep.subr.bf16.mxu0 %v4098_v30  ;;  %v3892_v26 = vpack.c.bf16 %v3382_v25, %v3381_v24 }
 0x4fb   : > { %3837 = vmatpush1.bf16.msra.mxu0 %v3836_v2  ;;  %v3384_v2 = vld [vmem:[%s5777_s7 + $0x348] sm:$0xff] }
 0x4fc   : > { %3838 = vmatprep.subr.bf16.mxu0 %v4098_v30  ;;  %v3895_v7 = vpack.c.bf16 %v3384_v2, %v3383_v19 }
 0x4ff   : > { %3840 = vmatpush1.bf16.msra.mxu0 %v3839_v27  ;;  %v3386_v27 = vld [vmem:[%s5777_s7 + $0x358] sm:$0xf] }
 0x500   : > { %3841 = vmatprep.subr.bf16.mxu0 %v4098_v30  ;;  %v3898_v28 = vpack.c.bf16 %v3386_v27, %v3385_v3 }
 0x503   : > { %3844 = vmatpush1.bf16.msk.msra.mxu0 %vm4235_vm3, %v3842_v31  ;;  %v3390_v31 = vld [vmem:[%s5777_s7 + $0x368] sm:$0xff] }
 0x504   : > { %3845 = vmatprep.subr.bf16.mxu0 %v4098_v30  ;;  %v3902_v32 = vpack.c.bf16 %v3390_v31, %v3389_v29 }
 0x506   : > { %2615 = vmatmul.mubr.f32.vlgmr.msra.gmra.mrb[14].mxu0 %v2542_v62  ;;  %v3392_v62 = vld [vmem:[%s5777_s7 + $0x378] sm:$0xff] }
 0x507   : > { %3847 = vmatpush1.bf16.msra.mxu0 %v3846_v59  ;;  %3368 = vmatprep.mubr.msk.f32.mxu0 %vm1364_vm11, %v2641_v55  ;;  %v3391_v59 = vld [vmem:[%s5777_s7 + $0x370] sm:$0xff]  ;;  %v3393_v55 = vld [vmem:[%s5777_s7 + $0x380] sm:$0xff] }
 0x508   : > { %3848 = vmatprep.subr.bf16.mxu0 %v4098_v30  ;;  %v3905_v33 = vpack.c.bf16 %v3392_v62, %v3391_v59 }
 0x50b   : > { %3850 = vmatpush1.bf16.msra.mxu0 %v3849_v34  ;;  %v3394_v34 = vld [vmem:[%s5777_s7 + $0x388] sm:$0xff] }
 0x50c   : > { %3851 = vmatprep.subr.bf16.mxu0 %v4098_v30  ;;  %v3908_v35 = vpack.c.bf16 %v3394_v34, %v3393_v55 }
 0x50f   : > { %3853 = vmatpush1.bf16.msra.mxu0 %v3852_v17  ;;  %v3911_v17 = vpack.c.bf16 %v3396_v13, %v3395_v10 }
 0x510   : > { %3854 = vmatprep.subr.bf16.mxu0 %v4098_v30 }
 0x513   : > { %3856 = vmatpush1.bf16.msra.mxu0 %v3855_v36  ;;  %v3914_v36 = vpack.c.bf16 %v3398_v4, %v3397_v48 }
 0x514   : > { %3857 = vmatprep.subr.bf16.mxu0 %v4098_v30 }
 0x517   : > { %3859 = vmatpush1.bf16.msra.mxu0 %v3858_v39  ;;  %v3917_v39 = vpack.c.bf16 %v3400_v38, %v3399_v37 }
 0x518   : > { %3860 = vmatprep.subr.bf16.mxu0 %v4098_v30 }
 0x51b   : > { %3862 = vmatpush1.bf16.msra.mxu0 %v3861_v42  ;;  %v3920_v42 = vpack.c.bf16 %v3402_v41, %v3401_v40 }
 0x51c   : > { %3863 = vmatprep.subr.bf16.mxu0 %v4098_v30 }
 0x51f   : > { %3865 = vmatpush1.bf16.msra.mxu0 %v3864_v45  ;;  %v3923_v45 = vpack.c.bf16 %v3404_v44, %v3403_v43 }
 0x520   : > { %3866 = vmatprep.subr.bf16.mxu0 %v4098_v30 }
 0x523   : > { %3868 = vmatpush1.bf16.msra.mxu0 %v3867_v49  ;;  %v3926_v49 = vpack.c.bf16 %v3406_v47, %v3405_v46 }
 0x524   : > { %3869 = vmatprep.subr.bf16.mxu0 %v4098_v30 }
 0x527   : > { %3872 = vmatpush1.bf16.msk.msra.mxu0 %vm4235_vm3, %v3870_v53 }
 0x528   : > { %3873 = vmatprep.subr.bf16.mxu0 %v4098_v30 }
 0x52a   : > { %2713 = vmatmul.mubr.f32.vlgmr.msra.gmra.mrb[14].mxu0 %v2640_v58 }
 0x52b   : > { %3875 = vmatpush1.bf16.msra.mxu0 %v3874_v57  ;;  %3388 = vmatprep.mubr.msk.f32.mxu0 %vm1364_vm11, %v2739_v63 }
 0x52c   : > { %3876 = vmatprep.subr.bf16.mxu0 %v4098_v30 }
 0x52f   : > { %3878 = vmatpush1.bf16.msra.mxu0 %v3877_v0 }
 0x530   : > { %3879 = vmatprep.subr.bf16.mxu0 %v4098_v30 }
 0x533   : > { %3881 = vmatpush1.bf16.msra.mxu0 %v3880_v6 }
 0x534   : > { %3882 = vmatprep.subr.bf16.mxu0 %v4098_v30 }
 0x537   : > { %3884 = vmatpush1.bf16.msra.mxu0 %v3883_v14 }
 0x538   : > { %3885 = vmatprep.subr.bf16.mxu0 %v4098_v30 }
 0x53b   : > { %3887 = vmatpush1.bf16.msra.mxu0 %v3886_v20 }
 0x53c   : > { %3888 = vmatprep.subr.bf16.mxu0 %v4098_v30 }
 0x53f   : > { %3890 = vmatpush1.bf16.msra.mxu0 %v3889_v23 }
 0x540   : > { %3891 = vmatprep.subr.bf16.mxu0 %v4098_v30 }
 0x543   : > { %3893 = vmatpush1.bf16.msra.mxu0 %v3892_v26 }
 0x544   : > { %3894 = vmatprep.subr.bf16.mxu0 %v4098_v30 }
 0x547   : > { %3896 = vmatpush1.bf16.msra.mxu0 %v3895_v7 }
 0x548   : > { %3897 = vmatprep.subr.bf16.mxu0 %v4098_v30 }
 0x54b   : > { %3900 = vmatpush1.bf16.msk.msra.mxu0 %vm4235_vm3, %v3898_v28 }
 0x54c   : > { %3901 = vmatprep.subr.bf16.mxu0 %v4098_v30 }
 0x54e   : > { %2811 = vmatmul.mubr.f32.vlgmr.msra.gmra.mrb[14].mxu0 %v2738_v52 }
 0x54f   : > { %3903 = vmatpush1.bf16.msra.mxu0 %v3902_v32  ;;  %3408 = vmatprep.mubr.msk.f32.mxu0 %vm1364_vm11, %v2837_v1 }
 0x550   : > { %3904 = vmatprep.subr.bf16.mxu0 %v4098_v30 }
 0x553   : > { %3906 = vmatpush1.bf16.msra.mxu0 %v3905_v33 }
 0x554   : > { %3907 = vmatprep.subr.bf16.mxu0 %v4098_v30 }
 0x557   : > { %3909 = vmatpush1.bf16.msra.mxu0 %v3908_v35 }
 0x558   : > { %3910 = vmatprep.subr.bf16.mxu0 %v4098_v30 }
 0x55b   : > { %3912 = vmatpush1.bf16.msra.mxu0 %v3911_v17 }
 0x55c   : > { %3913 = vmatprep.subr.bf16.mxu0 %v4098_v30 }
 0x55f   : > { %3915 = vmatpush1.bf16.msra.mxu0 %v3914_v36 }
 0x560   : > { %3916 = vmatprep.subr.bf16.mxu0 %v4098_v30 }
 0x563   : > { %3918 = vmatpush1.bf16.msra.mxu0 %v3917_v39 }
 0x564   : > { %3919 = vmatprep.subr.bf16.mxu0 %v4098_v30 }
 0x567   : > { %3921 = vmatpush1.bf16.msra.mxu0 %v3920_v42 }
 0x568   : > { %3922 = vmatprep.subr.bf16.mxu0 %v4098_v30 }
 0x56b   : > { %3924 = vmatpush1.bf16.msra.mxu0 %v3923_v45 }
 0x56c   : > { %3925 = vmatprep.subr.bf16.mxu0 %v4098_v30 }
 0x56f   : > { %3928 = vmatpush1.bf16.msk.msra.mxu0 %vm4235_vm3, %v3926_v49 }
 0x572   : > { %2909 = vmatmul.mubr.f32.vlgmr.msra.gmra.mrb[14].mxu0 %v2836_v50 }
 0x645   : > { %v2910_v53 = vpop.f32.mrb[14].mxu0 }
 0x646   : > { %v3937_v54 = vadd.f32 %v2910_v53, %v2230_v51  ;;  %v2912_v56 = vpop.f32.mrb[15].mxu0 }
 0x648   : > { %2915 = vst [vmem:[%s324_s23] sm:$0x1] %v3937_v54 }
 0x649   : > { %4045 = shalt.err (!%p4042_p3)
}
 0x64a   : > { %s4046_s14 = scalar_lea.hbm %s5728_s27, 16  ;;  %s4050_s23 = scalar_lea.hbm %s5779_s9, 32 }
 0x64b   : > { %p4047_p4 = scmp.ne.s32.totalorder %s5728_s27, %s4046_s14  ;;  %p4051_p9 = scmp.lt.u32.totalorder %s5728_s27, %s5779_s9 }
 0x64c   : > { %p4052_p10 = scmp.lt.u32.totalorder %s4050_s23, %s4046_s14  ;;  %p4054_p12 = scmp.lt.u32.totalorder %s4046_s14, %s5728_s27 }
 0x64d   : > { %p4048_p7 = pnand %p4047_p4, %p4188_p5 }
 0x64e   : > { %p4053_p11 = por %p4052_p10, %p4051_p9 }
 0x64f   : > { %p4049_p8 = pneg %p4048_p7 }
 0x650   : > { %p4055_p13 = por %p4054_p12, %p4053_p11 }
 0x652   : > { %p4056_p0 = pnand %p4055_p13, %p4049_p8 }
 0x654   : > { %4059 = shalt.err (!%p4056_p0)
}
 0x655   : > { %3990 = dma.vmem_to_hbm [thread:$0]  (%p4188_p5), %s5730_s25, 16, %s5728_s27, %s2917_s24  }
 0x656 PF: > { %p3996_p1 = scmp.ge.s32.totalorder %s4094_s12, 2  ;;  %s2941_s28 = sand.u32 1, %s4082_s30  }
 0x657   : > { %s2942_s13 = scalar_lea.sflag [#allocation5], %s2941_s28 }
 0x658   : > { %p3993_p2 = pnand %p3996_p1, %p4192_p6 }
 0x65a   : > { %4077 = dma.done.wait (!%p3993_p2), %s2942_s13, 16  }
 0x65b   : > { %4079 = vsyncadd (!%p3993_p2), %s2942_s13, 4294967280  ;;  %p19_p3 = scmp.ge.s32.totalorder %s4175_s15, 4   ;;  %s5784_s30 = smov %s4086_s10 }
 0x65c   : > { %s5785_s10 = smov %s4090_s11  ;;  %s5786_s11 = smov %s4186_s18 }
 0x65d   : > { %s5787_s12 = smov %s4175_s15  ;;  %21 = sbr.rel (!%p19_p3) target bundleno = 3 (0x3), region = 110 }
 0x664   :  { %2946 = vsyncpa [#allocation5], 1 }
 0x665   :  { %2948 = vsyncpa [#allocation5 + $0x1], 1 }

</bundles_post_ra>
